<compile_context>
chip_gen: v7x
topology: tpu7x:2x2x1
jax: 0.10.0
libtpu: 0.0.40
codegen_flags: <defaults>
</compile_context>

<pallas_src>
import functools
import math

import jax
import jax.numpy as jnp
from jax import lax
from jax.experimental import pallas as pl
from jax.experimental.pallas import tpu as pltpu

LN_EPS = 1e-5  # torch.nn.LayerNorm default
_SQRT_2_OVER_PI = math.sqrt(2.0 / math.pi)


# ----------------------------- in-kernel math helpers -----------------------------

def _layernorm(x, g, b):
    mu = jnp.mean(x, axis=-1, keepdims=True)
    var = jnp.mean((x - mu) ** 2, axis=-1, keepdims=True)
    return (x - mu) * lax.rsqrt(var + LN_EPS) * g + b


def _gelu_tanh(x):
    # tanh-based GELU: the transcendental lands on the EUP slot instead of a
    # VALU polynomial+divide. Max abs deviation from exact erf GELU ~3e-4.
    return 0.5 * x * (1.0 + jnp.tanh(_SQRT_2_OVER_PI * (x + 0.044715 * x * x * x)))


# ----------------------------------- fused kernel -----------------------------------

def _layer_kernel(x_ref, ln1g_ref, ln1b_ref, wqkv_ref, wout_ref, bout_ref,
                  ln2g_ref, ln2b_ref, w1_ref, b1_ref, w2_ref, b2_ref,
                  o_ref, ao_ref, *, heads):
    layer = pl.program_id(1)

    # Layer 0: seed the VMEM-resident carry from the (aliased) input window.
    @pl.when(layer == 0)
    def _():
        o_ref[...] = x_ref[...]

    bt, n, d = o_ref.shape            # batch tile, seq len, model dim (static)
    rows = bt * n
    dh = d // heads

    # Fold (Bt, N) into one row dim for the big matmuls (leading-dim reshape: free).
    x = o_ref[...].reshape(rows, d)   # f32 carry, resident across layers

    # ---------------- Residual(PreNorm(Attention)) ----------------
    xn = _layernorm(x, ln1g_ref[0], ln1b_ref[0])
    # (rows, 3D) QKV projection; softmax scale already folded into the q columns.
    qkv = jnp.dot(xn.astype(jnp.bfloat16), wqkv_ref[0],
                  preferred_element_type=jnp.float32).astype(jnp.bfloat16)

    for h in range(heads):            # static head loop; each matmul is Bt-batched
        q = qkv[:, h * dh:(h + 1) * dh].reshape(bt, n, dh)
        k = qkv[:, d + h * dh:d + (h + 1) * dh].reshape(bt, n, dh)
        v = qkv[:, 2 * d + h * dh:2 * d + (h + 1) * dh].reshape(bt, n, dh)
        dots = jnp.einsum('bqd,bkd->bqk', q, k,
                          preferred_element_type=jnp.float32)       # (Bt, N, N)
        m = jnp.max(dots, axis=-1, keepdims=True)
        e = jnp.exp(dots - m)
        inv = pl.reciprocal(jnp.sum(e, axis=-1, keepdims=True), approx=True)
        attn = (e * inv).astype(jnp.bfloat16)
        # Write straight into the head's lane range of the scratch slab (no concat).
        ao_ref[:, :, h * dh:(h + 1) * dh] = jnp.einsum(
            'bqk,bkd->bqd', attn, v, preferred_element_type=jnp.float32)

    ao = ao_ref[...].reshape(rows, d)                               # lane-dense (rows, D)
    x = (jnp.dot(ao.astype(jnp.bfloat16), wout_ref[0],
                 preferred_element_type=jnp.float32)
         + bout_ref[0] + x)

    # ---------------- Residual(PreNorm(FeedForward)) ----------------
    xn = _layernorm(x, ln2g_ref[0], ln2b_ref[0])
    hdn = jnp.dot(xn.astype(jnp.bfloat16), w1_ref[0],
                  preferred_element_type=jnp.float32) + b1_ref[0]
    hdn = _gelu_tanh(hdn)
    x = (jnp.dot(hdn.astype(jnp.bfloat16), w2_ref[0],
                 preferred_element_type=jnp.float32)
         + b2_ref[0] + x)

    o_ref[...] = x.reshape(bt, n, d)


# --------------------------------- pallas wrapper ---------------------------------

def _pick_batch_tile(batch, max_tile=16):
    bt = 1
    for c in range(1, min(batch, max_tile) + 1):
        if batch % c == 0:
            bt = c
    return bt


def transformer_forward(x, kparams, heads, batch_tile=None):
    B, N, D = x.shape
    depth = kparams["wqkv"].shape[0]
    M = kparams["w1"].shape[-1]
    assert D % heads == 0, "dim must be divisible by heads"
    # TODO(synk): production seq lens (e.g. N=197) need padding to a multiple of
    # 8/128 plus an explicit key-padding mask in the softmax; not needed here.

    Bt = batch_tile if batch_tile is not None else _pick_batch_tile(B)
    assert B % Bt == 0

    def w_spec(shape):
        zeros = (0,) * len(shape)
        return pl.BlockSpec((1,) + shape, lambda b, l, _z=zeros: (l,) + _z)

    # Explicit scoped-VMEM budget: 2x (double-buffered) per-layer weights +
    # activations + headroom, clamped to 64 MiB so the request also fits v7x.
    w_bytes = 2 * (D * 3 * D + D * D + D * M + M * D)          # bf16 weights / layer
    s_bytes = 4 * (6 * D + 2 * M)                              # ln + bias f32 / layer
    act_bytes = 4 * Bt * N * (4 * D + 3 * D + M + 4 * D)       # carry/in/out/scratch/qkv/hidden
    vmem_limit = int(min(64 * 2 ** 20,
                         max(32 * 2 ** 20,
                             2 * (2 * (w_bytes + s_bytes) + act_bytes))))

    kernel = functools.partial(_layer_kernel, heads=heads)
    return pl.pallas_call(
        kernel,
        out_shape=jax.ShapeDtypeStruct((B, N, D), jnp.float32),
        grid=(B // Bt, depth),
        in_specs=[
            pl.BlockSpec((Bt, N, D), lambda b, l: (b, 0, 0)),  # x (read at l == 0)
            w_spec((1, D)),         # ln1_g
            w_spec((1, D)),         # ln1_b
            w_spec((D, 3 * D)),     # wqkv (bf16, scale folded into q columns)
            w_spec((D, D)),         # wout (bf16)
            w_spec((1, D)),         # bout
            w_spec((1, D)),         # ln2_g
            w_spec((1, D)),         # ln2_b
            w_spec((D, M)),         # w1 (bf16)
            w_spec((1, M)),         # b1
            w_spec((M, D)),         # w2 (bf16)
            w_spec((1, D)),         # b2
        ],
        out_specs=pl.BlockSpec((Bt, N, D), lambda b, l: (b, 0, 0)),
        scratch_shapes=[pltpu.VMEM((Bt, N, D), jnp.float32)],  # per-head attn output slab
        input_output_aliases={0: 0},                            # x shares HBM with out
        compiler_params=pltpu.CompilerParams(
            dimension_semantics=("parallel", "arbitrary"),
            vmem_limit_bytes=vmem_limit),
    )(x, kparams["ln1_g"], kparams["ln1_b"], kparams["wqkv"], kparams["wout"],
      kparams["bout"], kparams["ln2_g"], kparams["ln2_b"], kparams["w1"],
      kparams["b1"], kparams["w2"], kparams["b2"])


# --------------------------- parameter init / kernel prep ---------------------------

def init_params(key, depth, dim, heads, mlp_dim):
    """f32 'PyTorch-layout' parameters (weights generated bf16-representable)."""
    keys = jax.random.split(key, 6 * depth)

    def nrm(i, shape):
        w = 0.05 * jax.random.normal(keys[i], shape, jnp.float32)
        return w.astype(jnp.bfloat16).astype(jnp.float32)   # bf16-representable values

    def stack(fn):
        return jnp.stack([fn(l) for l in range(depth)])

    return dict(
        ln1_g=jnp.ones((depth, 1, dim), jnp.float32),
        ln1_b=jnp.zeros((depth, 1, dim), jnp.float32),
        wqkv=stack(lambda l: nrm(6 * l + 0, (dim, 3 * dim))),
        wout=stack(lambda l: nrm(6 * l + 1, (dim, dim))),
        bout=stack(lambda l: nrm(6 * l + 2, (1, dim))),
        ln2_g=jnp.ones((depth, 1, dim), jnp.float32),
        ln2_b=jnp.zeros((depth, 1, dim), jnp.float32),
        w1=stack(lambda l: nrm(6 * l + 3, (dim, mlp_dim))),
        b1=stack(lambda l: nrm(6 * l + 4, (1, mlp_dim))),
        w2=stack(lambda l: nrm(6 * l + 5, (mlp_dim, dim))),
        b2=jnp.zeros((depth, 1, dim), jnp.float32),
    )


def prepare_kernel_params(params, dim):
    """One-time host-side prep: fold softmax scale into q columns, cast weights to bf16."""
    scale = float(dim) ** (-0.5)      # module scales by dim**-0.5 (full model dim, per spec)
    wqkv = params["wqkv"]
    wqkv = jnp.concatenate([wqkv[..., :dim] * scale, wqkv[..., dim:]], axis=-1)
    return dict(
        ln1_g=params["ln1_g"], ln1_b=params["ln1_b"],
        wqkv=wqkv.astype(jnp.bfloat16),
        wout=params["wout"].astype(jnp.bfloat16),
        bout=params["bout"],
        ln2_g=params["ln2_g"], ln2_b=params["ln2_b"],
        w1=params["w1"].astype(jnp.bfloat16), b1=params["b1"],
        w2=params["w2"].astype(jnp.bfloat16), b2=params["b2"],
    )


# ------------------------------ pure-JAX f32 reference ------------------------------

def reference_forward(x, params, heads):
    B, N, D = x.shape
    depth = params["wqkv"].shape[0]
    dh = D // heads
    scale = float(D) ** (-0.5)
    for l in range(depth):
        xn = _layernorm(x, params["ln1_g"][l], params["ln1_b"][l])
        qkv = xn @ params["wqkv"][l]
        qkv = qkv.reshape(B, N, 3, heads, dh).transpose(2, 0, 3, 1, 4)
        q, k, v = qkv[0], qkv[1], qkv[2]
        dots = jnp.einsum("bhid,bhjd->bhij", q, k) * scale
        attn = jax.nn.softmax(dots, axis=-1)
        out = jnp.einsum("bhij,bhjd->bhid", attn, v)
        out = out.transpose(0, 2, 1, 3).reshape(B, N, D)
        x = out @ params["wout"][l] + params["bout"][l] + x
        xn = _layernorm(x, params["ln2_g"][l], params["ln2_b"][l])
        h = xn @ params["w1"][l] + params["b1"][l]
        h = 0.5 * h * (1.0 + lax.erf(h / math.sqrt(2.0)))   # exact erf GELU (torch default)
        x = h @ params["w2"][l] + params["b2"][l] + x
    return x


# ------------------------------------- main -------------------------------------

if __name__ == "__main__":
    B, N, DIM, HEADS, MLP_DIM, DEPTH = 2, 8, 32, 4, 64, 2

    key = jax.random.PRNGKey(0)
    key, xkey = jax.random.split(key)
    x = jax.random.normal(xkey, (B, N, DIM), jnp.float32)
    params = init_params(key, DEPTH, DIM, HEADS, MLP_DIM)
    kparams = prepare_kernel_params(params, DIM)      # one-time host-side fold + bf16 cast

    fwd = jax.jit(lambda x_, p_: transformer_forward(x_, p_, HEADS))
    out = jax.block_until_ready(fwd(x, kparams))
    ref = jax.block_until_ready(reference_forward(x, params, HEADS))

    assert out.shape == (B, N, DIM)
    max_err = float(jnp.max(jnp.abs(out - ref)))
    # bf16 matmul operands + folded-scale rounding + tanh-GELU + approx-reciprocal
    # vs the exact-erf f32 reference: observed error ~1e-3, tolerance 1e-2.
    assert jnp.allclose(out, ref, atol=1e-2, rtol=1e-2), \
        f"mismatch: max abs err {max_err}"
    print("KERNEL_OK")
</pallas_src>

<mosaic_0001>
module attributes {stable_mosaic.version = 11 : i64} {
  func.func @_layer_kernel(%arg0: i32, %arg1: i32, %arg2: memref<2x8x32xf32, #tpu.memory_space<vmem>>, %arg3: memref<1x1x32xf32, #tpu.memory_space<vmem>>, %arg4: memref<1x1x32xf32, #tpu.memory_space<vmem>>, %arg5: memref<1x32x96xbf16, #tpu.memory_space<vmem>>, %arg6: memref<1x32x32xbf16, #tpu.memory_space<vmem>>, %arg7: memref<1x1x32xf32, #tpu.memory_space<vmem>>, %arg8: memref<1x1x32xf32, #tpu.memory_space<vmem>>, %arg9: memref<1x1x32xf32, #tpu.memory_space<vmem>>, %arg10: memref<1x32x64xbf16, #tpu.memory_space<vmem>>, %arg11: memref<1x1x64xf32, #tpu.memory_space<vmem>>, %arg12: memref<1x64x32xbf16, #tpu.memory_space<vmem>>, %arg13: memref<1x1x32xf32, #tpu.memory_space<vmem>>, %arg14: memref<2x8x32xf32, #tpu.memory_space<vmem>>, %arg15: memref<2x8x32xf32, #tpu.memory_space<vmem>>) attributes {dimension_semantics = [#tpu.dimension_semantics<parallel>, #tpu.dimension_semantics<arbitrary>], iteration_bounds = array<i64: 1, 2>, scalar_prefetch = 0 : i64, scratch_operands = 1 : i64, tpu.core_type = #tpu.core_type<tc>, window_params = [{transform_indices = @transform_0, window_bounds = array<i64: 2, 8, 32>}, {transform_indices = @transform_1, window_bounds = array<i64: 1, 1, 32>}, {transform_indices = @transform_2, window_bounds = array<i64: 1, 1, 32>}, {transform_indices = @transform_3, window_bounds = array<i64: 1, 32, 96>}, {transform_indices = @transform_4, window_bounds = array<i64: 1, 32, 32>}, {transform_indices = @transform_5, window_bounds = array<i64: 1, 1, 32>}, {transform_indices = @transform_6, window_bounds = array<i64: 1, 1, 32>}, {transform_indices = @transform_7, window_bounds = array<i64: 1, 1, 32>}, {transform_indices = @transform_8, window_bounds = array<i64: 1, 32, 64>}, {transform_indices = @transform_9, window_bounds = array<i64: 1, 1, 64>}, {transform_indices = @transform_10, window_bounds = array<i64: 1, 64, 32>}, {transform_indices = @transform_11, window_bounds = array<i64: 1, 1, 32>}, {transform_indices = @transform_12, window_bounds = array<i64: 2, 8, 32>}]} {
    %c0_i32 = arith.constant 0 : i32
    %0 = arith.cmpi eq, %arg1, %c0_i32 : i32
    %1 = arith.extui %0 : i1 to i32
    %c0_i32_0 = arith.constant 0 : i32
    %2 = arith.cmpi ne, %1, %c0_i32_0 : i32
    scf.if %2 {
      %c0_84 = arith.constant 0 : index
      %c0_85 = arith.constant 0 : index
      %c0_86 = arith.constant 0 : index
      %185 = vector.load %arg2[%c0_84, %c0_85, %c0_86] : memref<2x8x32xf32, #tpu.memory_space<vmem>>, vector<2x8x32xf32>
      %c0_87 = arith.constant 0 : index
      %c0_88 = arith.constant 0 : index
      %c0_89 = arith.constant 0 : index
      %186 = vector.load %arg14[%c0_87, %c0_88, %c0_89] : memref<2x8x32xf32, #tpu.memory_space<vmem>>, vector<2x8x32xf32>
      tpu.vector_store %arg14[%c0_87, %c0_88, %c0_89], %185 {strides = array<i32>} : memref<2x8x32xf32, #tpu.memory_space<vmem>>, vector<2x8x32xf32>,
    } else {
    }
    %c0 = arith.constant 0 : index
    %c0_1 = arith.constant 0 : index
    %c0_2 = arith.constant 0 : index
    %3 = vector.load %arg14[%c0, %c0_1, %c0_2] : memref<2x8x32xf32, #tpu.memory_space<vmem>>, vector<2x8x32xf32>
    %4 = vector.shape_cast %3 : vector<2x8x32xf32> to vector<16x32xf32>
    %c0_3 = arith.constant 0 : index
    %c0_4 = arith.constant 0 : index
    %c0_5 = arith.constant 0 : index
    %5 = vector.load %arg3[%c0_3, %c0_4, %c0_5] : memref<1x1x32xf32, #tpu.memory_space<vmem>>, vector<1x1x32xf32>
    %6 = vector.shape_cast %5 : vector<1x1x32xf32> to vector<1x32xf32>
    %c0_6 = arith.constant 0 : index
    %c0_7 = arith.constant 0 : index
    %c0_8 = arith.constant 0 : index
    %7 = vector.load %arg4[%c0_6, %c0_7, %c0_8] : memref<1x1x32xf32, #tpu.memory_space<vmem>>, vector<1x1x32xf32>
    %8 = vector.shape_cast %7 : vector<1x1x32xf32> to vector<1x32xf32>
    %cst = arith.constant dense<0.000000e+00> : vector<16xf32>
    %9 = vector.multi_reduction <add>, %4, %cst [1] : vector<16x32xf32> to vector<16xf32>
    %10 = vector.shape_cast %9 : vector<16xf32> to vector<16x1xf32>
    %cst_9 = arith.constant 3.200000e+01 : f32
    %11 = vector.broadcast %cst_9 : f32 to vector<16x1xf32>
    %12 = arith.divf %10, %11 : vector<16x1xf32>
    %13 = vector.broadcast %12 : vector<16x1xf32> to vector<16x32xf32>
    %14 = arith.subf %4, %13 : vector<16x32xf32>
    %15 = arith.mulf %14, %14 : vector<16x32xf32>
    %cst_10 = arith.constant dense<0.000000e+00> : vector<16xf32>
    %16 = vector.multi_reduction <add>, %15, %cst_10 [1] : vector<16x32xf32> to vector<16xf32>
    %17 = vector.shape_cast %16 : vector<16xf32> to vector<16x1xf32>
    %cst_11 = arith.constant 3.200000e+01 : f32
    %18 = vector.broadcast %cst_11 : f32 to vector<16x1xf32>
    %19 = arith.divf %17, %18 : vector<16x1xf32>
    %20 = vector.broadcast %12 : vector<16x1xf32> to vector<16x32xf32>
    %21 = arith.subf %4, %20 : vector<16x32xf32>
    %cst_12 = arith.constant 9.99999974E-6 : f32
    %22 = vector.broadcast %cst_12 : f32 to vector<16x1xf32>
    %23 = arith.addf %19, %22 : vector<16x1xf32>
    %24 = math.rsqrt %23 : vector<16x1xf32>
    %25 = vector.broadcast %24 : vector<16x1xf32> to vector<16x32xf32>
    %26 = arith.mulf %21, %25 : vector<16x32xf32>
    %27 = vector.broadcast %6 : vector<1x32xf32> to vector<16x32xf32>
    %28 = arith.mulf %26, %27 : vector<16x32xf32>
    %29 = vector.broadcast %8 : vector<1x32xf32> to vector<16x32xf32>
    %30 = arith.addf %28, %29 : vector<16x32xf32>
    %31 = arith.truncf %30 : vector<16x32xf32> to vector<16x32xbf16>
    %c0_13 = arith.constant 0 : index
    %c0_14 = arith.constant 0 : index
    %c0_15 = arith.constant 0 : index
    %32 = vector.load %arg5[%c0_13, %c0_14, %c0_15] : memref<1x32x96xbf16, #tpu.memory_space<vmem>>, vector<1x32x96xbf16>
    %33 = vector.shape_cast %32 : vector<1x32x96xbf16> to vector<32x96xbf16>
    %cst_16 = arith.constant dense<0.000000e+00> : vector<16x96xf32>
    %34 = tpu.matmul %31, %33, %cst_16 {dimension_numbers = #tpu.dot_dimension_numbers<[1], [0], [0], [1], [0, 0, 1, 1], [], []>} : vector<16x32xbf16>, vector<32x96xbf16>, vector<16x96xf32> -> vector<16x96xf32>
    %35 = arith.truncf %34 : vector<16x96xf32> to vector<16x96xbf16>
    %36 = vector.extract_strided_slice %35 {offsets = [0, 0], sizes = [16, 8], strides = [1, 1]} : vector<16x96xbf16> to vector<16x8xbf16>
    %37 = vector.shape_cast %36 : vector<16x8xbf16> to vector<2x8x8xbf16>
    %38 = vector.extract_strided_slice %35 {offsets = [0, 32], sizes = [16, 8], strides = [1, 1]} : vector<16x96xbf16> to vector<16x8xbf16>
    %39 = vector.shape_cast %38 : vector<16x8xbf16> to vector<2x8x8xbf16>
    %40 = vector.extract_strided_slice %35 {offsets = [0, 64], sizes = [16, 8], strides = [1, 1]} : vector<16x96xbf16> to vector<16x8xbf16>
    %41 = vector.shape_cast %40 : vector<16x8xbf16> to vector<2x8x8xbf16>
    "tpu.trace_start"() <{level = 10 : i32, message = "bqd,bkd->bqk"}> : () -> ()
    %cst_17 = arith.constant dense<0.000000e+00> : vector<2x8x8xf32>
    %42 = tpu.matmul %37, %39, %cst_17 {dimension_numbers = #tpu.dot_dimension_numbers<[2], [2], [1], [1], [0, 0, 0, 1, 1, 1], [0], [0]>} : vector<2x8x8xbf16>, vector<2x8x8xbf16>, vector<2x8x8xf32> -> vector<2x8x8xf32>
    "tpu.trace_stop"() : () -> ()
    %cst_18 = arith.constant dense<0xFF800000> : vector<2x8xf32>
    %43 = vector.multi_reduction <maximumf>, %42, %cst_18 [2] : vector<2x8x8xf32> to vector<2x8xf32>
    %44 = vector.shape_cast %43 : vector<2x8xf32> to vector<2x8x1xf32>
    %45 = vector.broadcast %44 : vector<2x8x1xf32> to vector<2x8x8xf32>
    %46 = arith.subf %42, %45 : vector<2x8x8xf32>
    %47 = math.exp %46 : vector<2x8x8xf32>
    %cst_19 = arith.constant dense<0.000000e+00> : vector<2x8xf32>
    %48 = vector.multi_reduction <add>, %47, %cst_19 [2] : vector<2x8x8xf32> to vector<2x8xf32>
    %49 = vector.shape_cast %48 : vector<2x8xf32> to vector<2x8x1xf32>
    %50 = tpu.reciprocal %49 {approx = true} : vector<2x8x1xf32> -> vector<2x8x1xf32>
    %51 = vector.broadcast %50 : vector<2x8x1xf32> to vector<2x8x8xf32>
    %52 = arith.mulf %47, %51 : vector<2x8x8xf32>
    %53 = arith.truncf %52 : vector<2x8x8xf32> to vector<2x8x8xbf16>
    "tpu.trace_start"() <{level = 10 : i32, message = "bqk,bkd->bqd"}> : () -> ()
    %cst_20 = arith.constant dense<0.000000e+00> : vector<2x8x8xf32>
    %54 = tpu.matmul %53, %41, %cst_20 {dimension_numbers = #tpu.dot_dimension_numbers<[2], [1], [1], [2], [0, 0, 0, 1, 1, 2], [0], [0]>} : vector<2x8x8xbf16>, vector<2x8x8xbf16>, vector<2x8x8xf32> -> vector<2x8x8xf32>
    "tpu.trace_stop"() : () -> ()
    %c0_21 = arith.constant 0 : index
    %c0_22 = arith.constant 0 : index
    %c0_23 = arith.constant 0 : index
    %55 = vector.load %arg15[%c0_21, %c0_22, %c0_23] : memref<2x8x32xf32, #tpu.memory_space<vmem>>, vector<2x8x8xf32>
    tpu.vector_store %arg15[%c0_21, %c0_22, %c0_23], %54 {strides = array<i32>} : memref<2x8x32xf32, #tpu.memory_space<vmem>>, vector<2x8x8xf32>,
    %56 = vector.extract_strided_slice %35 {offsets = [0, 8], sizes = [16, 8], strides = [1, 1]} : vector<16x96xbf16> to vector<16x8xbf16>
    %57 = vector.shape_cast %56 : vector<16x8xbf16> to vector<2x8x8xbf16>
    %58 = vector.extract_strided_slice %35 {offsets = [0, 40], sizes = [16, 8], strides = [1, 1]} : vector<16x96xbf16> to vector<16x8xbf16>
    %59 = vector.shape_cast %58 : vector<16x8xbf16> to vector<2x8x8xbf16>
    %60 = vector.extract_strided_slice %35 {offsets = [0, 72], sizes = [16, 8], strides = [1, 1]} : vector<16x96xbf16> to vector<16x8xbf16>
    %61 = vector.shape_cast %60 : vector<16x8xbf16> to vector<2x8x8xbf16>
    "tpu.trace_start"() <{level = 10 : i32, message = "bqd,bkd->bqk"}> : () -> ()
    %cst_24 = arith.constant dense<0.000000e+00> : vector<2x8x8xf32>
    %62 = tpu.matmul %57, %59, %cst_24 {dimension_numbers = #tpu.dot_dimension_numbers<[2], [2], [1], [1], [0, 0, 0, 1, 1, 1], [0], [0]>} : vector<2x8x8xbf16>, vector<2x8x8xbf16>, vector<2x8x8xf32> -> vector<2x8x8xf32>
    "tpu.trace_stop"() : () -> ()
    %cst_25 = arith.constant dense<0xFF800000> : vector<2x8xf32>
    %63 = vector.multi_reduction <maximumf>, %62, %cst_25 [2] : vector<2x8x8xf32> to vector<2x8xf32>
    %64 = vector.shape_cast %63 : vector<2x8xf32> to vector<2x8x1xf32>
    %65 = vector.broadcast %64 : vector<2x8x1xf32> to vector<2x8x8xf32>
    %66 = arith.subf %62, %65 : vector<2x8x8xf32>
    %67 = math.exp %66 : vector<2x8x8xf32>
    %cst_26 = arith.constant dense<0.000000e+00> : vector<2x8xf32>
    %68 = vector.multi_reduction <add>, %67, %cst_26 [2] : vector<2x8x8xf32> to vector<2x8xf32>
    %69 = vector.shape_cast %68 : vector<2x8xf32> to vector<2x8x1xf32>
    %70 = tpu.reciprocal %69 {approx = true} : vector<2x8x1xf32> -> vector<2x8x1xf32>
    %71 = vector.broadcast %70 : vector<2x8x1xf32> to vector<2x8x8xf32>
    %72 = arith.mulf %67, %71 : vector<2x8x8xf32>
    %73 = arith.truncf %72 : vector<2x8x8xf32> to vector<2x8x8xbf16>
    "tpu.trace_start"() <{level = 10 : i32, message = "bqk,bkd->bqd"}> : () -> ()
    %cst_27 = arith.constant dense<0.000000e+00> : vector<2x8x8xf32>
    %74 = tpu.matmul %73, %61, %cst_27 {dimension_numbers = #tpu.dot_dimension_numbers<[2], [1], [1], [2], [0, 0, 0, 1, 1, 2], [0], [0]>} : vector<2x8x8xbf16>, vector<2x8x8xbf16>, vector<2x8x8xf32> -> vector<2x8x8xf32>
    "tpu.trace_stop"() : () -> ()
    %c0_28 = arith.constant 0 : index
    %c0_29 = arith.constant 0 : index
    %c8 = arith.constant 8 : index
    %75 = vector.load %arg15[%c0_28, %c0_29, %c8] : memref<2x8x32xf32, #tpu.memory_space<vmem>>, vector<2x8x8xf32>
    tpu.vector_store %arg15[%c0_28, %c0_29, %c8], %74 {strides = array<i32>} : memref<2x8x32xf32, #tpu.memory_space<vmem>>, vector<2x8x8xf32>,
    %76 = vector.extract_strided_slice %35 {offsets = [0, 16], sizes = [16, 8], strides = [1, 1]} : vector<16x96xbf16> to vector<16x8xbf16>
    %77 = vector.shape_cast %76 : vector<16x8xbf16> to vector<2x8x8xbf16>
    %78 = vector.extract_strided_slice %35 {offsets = [0, 48], sizes = [16, 8], strides = [1, 1]} : vector<16x96xbf16> to vector<16x8xbf16>
    %79 = vector.shape_cast %78 : vector<16x8xbf16> to vector<2x8x8xbf16>
    %80 = vector.extract_strided_slice %35 {offsets = [0, 80], sizes = [16, 8], strides = [1, 1]} : vector<16x96xbf16> to vector<16x8xbf16>
    %81 = vector.shape_cast %80 : vector<16x8xbf16> to vector<2x8x8xbf16>
    "tpu.trace_start"() <{level = 10 : i32, message = "bqd,bkd->bqk"}> : () -> ()
    %cst_30 = arith.constant dense<0.000000e+00> : vector<2x8x8xf32>
    %82 = tpu.matmul %77, %79, %cst_30 {dimension_numbers = #tpu.dot_dimension_numbers<[2], [2], [1], [1], [0, 0, 0, 1, 1, 1], [0], [0]>} : vector<2x8x8xbf16>, vector<2x8x8xbf16>, vector<2x8x8xf32> -> vector<2x8x8xf32>
    "tpu.trace_stop"() : () -> ()
    %cst_31 = arith.constant dense<0xFF800000> : vector<2x8xf32>
    %83 = vector.multi_reduction <maximumf>, %82, %cst_31 [2] : vector<2x8x8xf32> to vector<2x8xf32>
    %84 = vector.shape_cast %83 : vector<2x8xf32> to vector<2x8x1xf32>
    %85 = vector.broadcast %84 : vector<2x8x1xf32> to vector<2x8x8xf32>
    %86 = arith.subf %82, %85 : vector<2x8x8xf32>
    %87 = math.exp %86 : vector<2x8x8xf32>
    %cst_32 = arith.constant dense<0.000000e+00> : vector<2x8xf32>
    %88 = vector.multi_reduction <add>, %87, %cst_32 [2] : vector<2x8x8xf32> to vector<2x8xf32>
    %89 = vector.shape_cast %88 : vector<2x8xf32> to vector<2x8x1xf32>
    %90 = tpu.reciprocal %89 {approx = true} : vector<2x8x1xf32> -> vector<2x8x1xf32>
    %91 = vector.broadcast %90 : vector<2x8x1xf32> to vector<2x8x8xf32>
    %92 = arith.mulf %87, %91 : vector<2x8x8xf32>
    %93 = arith.truncf %92 : vector<2x8x8xf32> to vector<2x8x8xbf16>
    "tpu.trace_start"() <{level = 10 : i32, message = "bqk,bkd->bqd"}> : () -> ()
    %cst_33 = arith.constant dense<0.000000e+00> : vector<2x8x8xf32>
    %94 = tpu.matmul %93, %81, %cst_33 {dimension_numbers = #tpu.dot_dimension_numbers<[2], [1], [1], [2], [0, 0, 0, 1, 1, 2], [0], [0]>} : vector<2x8x8xbf16>, vector<2x8x8xbf16>, vector<2x8x8xf32> -> vector<2x8x8xf32>
    "tpu.trace_stop"() : () -> ()
    %c0_34 = arith.constant 0 : index
    %c0_35 = arith.constant 0 : index
    %c16 = arith.constant 16 : index
    %95 = vector.load %arg15[%c0_34, %c0_35, %c16] : memref<2x8x32xf32, #tpu.memory_space<vmem>>, vector<2x8x8xf32>
    tpu.vector_store %arg15[%c0_34, %c0_35, %c16], %94 {strides = array<i32>} : memref<2x8x32xf32, #tpu.memory_space<vmem>>, vector<2x8x8xf32>,
    %96 = vector.extract_strided_slice %35 {offsets = [0, 24], sizes = [16, 8], strides = [1, 1]} : vector<16x96xbf16> to vector<16x8xbf16>
    %97 = vector.shape_cast %96 : vector<16x8xbf16> to vector<2x8x8xbf16>
    %98 = vector.extract_strided_slice %35 {offsets = [0, 56], sizes = [16, 8], strides = [1, 1]} : vector<16x96xbf16> to vector<16x8xbf16>
    %99 = vector.shape_cast %98 : vector<16x8xbf16> to vector<2x8x8xbf16>
    %100 = vector.extract_strided_slice %35 {offsets = [0, 88], sizes = [16, 8], strides = [1, 1]} : vector<16x96xbf16> to vector<16x8xbf16>
    %101 = vector.shape_cast %100 : vector<16x8xbf16> to vector<2x8x8xbf16>
    "tpu.trace_start"() <{level = 10 : i32, message = "bqd,bkd->bqk"}> : () -> ()
    %cst_36 = arith.constant dense<0.000000e+00> : vector<2x8x8xf32>
    %102 = tpu.matmul %97, %99, %cst_36 {dimension_numbers = #tpu.dot_dimension_numbers<[2], [2], [1], [1], [0, 0, 0, 1, 1, 1], [0], [0]>} : vector<2x8x8xbf16>, vector<2x8x8xbf16>, vector<2x8x8xf32> -> vector<2x8x8xf32>
    "tpu.trace_stop"() : () -> ()
    %cst_37 = arith.constant dense<0xFF800000> : vector<2x8xf32>
    %103 = vector.multi_reduction <maximumf>, %102, %cst_37 [2] : vector<2x8x8xf32> to vector<2x8xf32>
    %104 = vector.shape_cast %103 : vector<2x8xf32> to vector<2x8x1xf32>
    %105 = vector.broadcast %104 : vector<2x8x1xf32> to vector<2x8x8xf32>
    %106 = arith.subf %102, %105 : vector<2x8x8xf32>
    %107 = math.exp %106 : vector<2x8x8xf32>
    %cst_38 = arith.constant dense<0.000000e+00> : vector<2x8xf32>
    %108 = vector.multi_reduction <add>, %107, %cst_38 [2] : vector<2x8x8xf32> to vector<2x8xf32>
    %109 = vector.shape_cast %108 : vector<2x8xf32> to vector<2x8x1xf32>
    %110 = tpu.reciprocal %109 {approx = true} : vector<2x8x1xf32> -> vector<2x8x1xf32>
    %111 = vector.broadcast %110 : vector<2x8x1xf32> to vector<2x8x8xf32>
    %112 = arith.mulf %107, %111 : vector<2x8x8xf32>
    %113 = arith.truncf %112 : vector<2x8x8xf32> to vector<2x8x8xbf16>
    "tpu.trace_start"() <{level = 10 : i32, message = "bqk,bkd->bqd"}> : () -> ()
    %cst_39 = arith.constant dense<0.000000e+00> : vector<2x8x8xf32>
    %114 = tpu.matmul %113, %101, %cst_39 {dimension_numbers = #tpu.dot_dimension_numbers<[2], [1], [1], [2], [0, 0, 0, 1, 1, 2], [0], [0]>} : vector<2x8x8xbf16>, vector<2x8x8xbf16>, vector<2x8x8xf32> -> vector<2x8x8xf32>
    "tpu.trace_stop"() : () -> ()
    %c0_40 = arith.constant 0 : index
    %c0_41 = arith.constant 0 : index
    %c24 = arith.constant 24 : index
    %115 = vector.load %arg15[%c0_40, %c0_41, %c24] : memref<2x8x32xf32, #tpu.memory_space<vmem>>, vector<2x8x8xf32>
    tpu.vector_store %arg15[%c0_40, %c0_41, %c24], %114 {strides = array<i32>} : memref<2x8x32xf32, #tpu.memory_space<vmem>>, vector<2x8x8xf32>,
    %c0_42 = arith.constant 0 : index
    %c0_43 = arith.constant 0 : index
    %c0_44 = arith.constant 0 : index
    %116 = vector.load %arg15[%c0_42, %c0_43, %c0_44] : memref<2x8x32xf32, #tpu.memory_space<vmem>>, vector<2x8x32xf32>
    %117 = vector.shape_cast %116 : vector<2x8x32xf32> to vector<16x32xf32>
    %118 = arith.truncf %117 : vector<16x32xf32> to vector<16x32xbf16>
    %c0_45 = arith.constant 0 : index
    %c0_46 = arith.constant 0 : index
    %c0_47 = arith.constant 0 : index
    %119 = vector.load %arg6[%c0_45, %c0_46, %c0_47] : memref<1x32x32xbf16, #tpu.memory_space<vmem>>, vector<1x32x32xbf16>
    %120 = vector.shape_cast %119 : vector<1x32x32xbf16> to vector<32x32xbf16>
    %cst_48 = arith.constant dense<0.000000e+00> : vector<16x32xf32>
    %121 = tpu.matmul %118, %120, %cst_48 {dimension_numbers = #tpu.dot_dimension_numbers<[1], [0], [0], [1], [0, 0, 1, 1], [], []>} : vector<16x32xbf16>, vector<32x32xbf16>, vector<16x32xf32> -> vector<16x32xf32>
    %c0_49 = arith.constant 0 : index
    %c0_50 = arith.constant 0 : index
    %c0_51 = arith.constant 0 : index
    %122 = vector.load %arg7[%c0_49, %c0_50, %c0_51] : memref<1x1x32xf32, #tpu.memory_space<vmem>>, vector<1x1x32xf32>
    %123 = vector.shape_cast %122 : vector<1x1x32xf32> to vector<1x32xf32>
    %124 = vector.broadcast %123 : vector<1x32xf32> to vector<16x32xf32>
    %125 = arith.addf %121, %124 : vector<16x32xf32>
    %126 = arith.addf %125, %4 : vector<16x32xf32>
    %c0_52 = arith.constant 0 : index
    %c0_53 = arith.constant 0 : index
    %c0_54 = arith.constant 0 : index
    %127 = vector.load %arg8[%c0_52, %c0_53, %c0_54] : memref<1x1x32xf32, #tpu.memory_space<vmem>>, vector<1x1x32xf32>
    %128 = vector.shape_cast %127 : vector<1x1x32xf32> to vector<1x32xf32>
    %c0_55 = arith.constant 0 : index
    %c0_56 = arith.constant 0 : index
    %c0_57 = arith.constant 0 : index
    %129 = vector.load %arg9[%c0_55, %c0_56, %c0_57] : memref<1x1x32xf32, #tpu.memory_space<vmem>>, vector<1x1x32xf32>
    %130 = vector.shape_cast %129 : vector<1x1x32xf32> to vector<1x32xf32>
    %cst_58 = arith.constant dense<0.000000e+00> : vector<16xf32>
    %131 = vector.multi_reduction <add>, %126, %cst_58 [1] : vector<16x32xf32> to vector<16xf32>
    %132 = vector.shape_cast %131 : vector<16xf32> to vector<16x1xf32>
    %cst_59 = arith.constant 3.200000e+01 : f32
    %133 = vector.broadcast %cst_59 : f32 to vector<16x1xf32>
    %134 = arith.divf %132, %133 : vector<16x1xf32>
    %135 = vector.broadcast %134 : vector<16x1xf32> to vector<16x32xf32>
    %136 = arith.subf %126, %135 : vector<16x32xf32>
    %137 = arith.mulf %136, %136 : vector<16x32xf32>
    %cst_60 = arith.constant dense<0.000000e+00> : vector<16xf32>
    %138 = vector.multi_reduction <add>, %137, %cst_60 [1] : vector<16x32xf32> to vector<16xf32>
    %139 = vector.shape_cast %138 : vector<16xf32> to vector<16x1xf32>
    %cst_61 = arith.constant 3.200000e+01 : f32
    %140 = vector.broadcast %cst_61 : f32 to vector<16x1xf32>
    %141 = arith.divf %139, %140 : vector<16x1xf32>
    %142 = vector.broadcast %134 : vector<16x1xf32> to vector<16x32xf32>
    %143 = arith.subf %126, %142 : vector<16x32xf32>
    %cst_62 = arith.constant 9.99999974E-6 : f32
    %144 = vector.broadcast %cst_62 : f32 to vector<16x1xf32>
    %145 = arith.addf %141, %144 : vector<16x1xf32>
    %146 = math.rsqrt %145 : vector<16x1xf32>
    %147 = vector.broadcast %146 : vector<16x1xf32> to vector<16x32xf32>
    %148 = arith.mulf %143, %147 : vector<16x32xf32>
    %149 = vector.broadcast %128 : vector<1x32xf32> to vector<16x32xf32>
    %150 = arith.mulf %148, %149 : vector<16x32xf32>
    %151 = vector.broadcast %130 : vector<1x32xf32> to vector<16x32xf32>
    %152 = arith.addf %150, %151 : vector<16x32xf32>
    %153 = arith.truncf %152 : vector<16x32xf32> to vector<16x32xbf16>
    %c0_63 = arith.constant 0 : index
    %c0_64 = arith.constant 0 : index
    %c0_65 = arith.constant 0 : index
    %154 = vector.load %arg10[%c0_63, %c0_64, %c0_65] : memref<1x32x64xbf16, #tpu.memory_space<vmem>>, vector<1x32x64xbf16>
    %155 = vector.shape_cast %154 : vector<1x32x64xbf16> to vector<32x64xbf16>
    %cst_66 = arith.constant dense<0.000000e+00> : vector<16x64xf32>
    %156 = tpu.matmul %153, %155, %cst_66 {dimension_numbers = #tpu.dot_dimension_numbers<[1], [0], [0], [1], [0, 0, 1, 1], [], []>} : vector<16x32xbf16>, vector<32x64xbf16>, vector<16x64xf32> -> vector<16x64xf32>
    %c0_67 = arith.constant 0 : index
    %c0_68 = arith.constant 0 : index
    %c0_69 = arith.constant 0 : index
    %157 = vector.load %arg11[%c0_67, %c0_68, %c0_69] : memref<1x1x64xf32, #tpu.memory_space<vmem>>, vector<1x1x64xf32>
    %158 = vector.shape_cast %157 : vector<1x1x64xf32> to vector<1x64xf32>
    %159 = vector.broadcast %158 : vector<1x64xf32> to vector<16x64xf32>
    %160 = arith.addf %156, %159 : vector<16x64xf32>
    %cst_70 = arith.constant 5.000000e-01 : f32
    %161 = vector.broadcast %cst_70 : f32 to vector<16x64xf32>
    %162 = arith.mulf %161, %160 : vector<16x64xf32>
    %cst_71 = arith.constant 4.471500e-02 : f32
    %163 = vector.broadcast %cst_71 : f32 to vector<16x64xf32>
    %164 = arith.mulf %163, %160 : vector<16x64xf32>
    %165 = arith.mulf %164, %160 : vector<16x64xf32>
    %166 = arith.mulf %165, %160 : vector<16x64xf32>
    %167 = arith.addf %160, %166 : vector<16x64xf32>
    %cst_72 = arith.constant 0.797884583 : f32
    %168 = vector.broadcast %cst_72 : f32 to vector<16x64xf32>
    %169 = arith.mulf %168, %167 : vector<16x64xf32>
    %170 = math.tanh %169 : vector<16x64xf32>
    %cst_73 = arith.constant 1.000000e+00 : f32
    %171 = vector.broadcast %cst_73 : f32 to vector<16x64xf32>
    %172 = arith.addf %171, %170 : vector<16x64xf32>
    %173 = arith.mulf %162, %172 : vector<16x64xf32>
    %174 = arith.truncf %173 : vector<16x64xf32> to vector<16x64xbf16>
    %c0_74 = arith.constant 0 : index
    %c0_75 = arith.constant 0 : index
    %c0_76 = arith.constant 0 : index
    %175 = vector.load %arg12[%c0_74, %c0_75, %c0_76] : memref<1x64x32xbf16, #tpu.memory_space<vmem>>, vector<1x64x32xbf16>
    %176 = vector.shape_cast %175 : vector<1x64x32xbf16> to vector<64x32xbf16>
    %cst_77 = arith.constant dense<0.000000e+00> : vector<16x32xf32>
    %177 = tpu.matmul %174, %176, %cst_77 {dimension_numbers = #tpu.dot_dimension_numbers<[1], [0], [0], [1], [0, 0, 1, 1], [], []>} : vector<16x64xbf16>, vector<64x32xbf16>, vector<16x32xf32> -> vector<16x32xf32>
    %c0_78 = arith.constant 0 : index
    %c0_79 = arith.constant 0 : index
    %c0_80 = arith.constant 0 : index
    %178 = vector.load %arg13[%c0_78, %c0_79, %c0_80] : memref<1x1x32xf32, #tpu.memory_space<vmem>>, vector<1x1x32xf32>
    %179 = vector.shape_cast %178 : vector<1x1x32xf32> to vector<1x32xf32>
    %180 = vector.broadcast %179 : vector<1x32xf32> to vector<16x32xf32>
    %181 = arith.addf %177, %180 : vector<16x32xf32>
    %182 = arith.addf %181, %126 : vector<16x32xf32>
    %183 = vector.shape_cast %182 : vector<16x32xf32> to vector<2x8x32xf32>
    %c0_81 = arith.constant 0 : index
    %c0_82 = arith.constant 0 : index
    %c0_83 = arith.constant 0 : index
    %184 = vector.load %arg14[%c0_81, %c0_82, %c0_83] : memref<2x8x32xf32, #tpu.memory_space<vmem>>, vector<2x8x32xf32>
    tpu.vector_store %arg14[%c0_81, %c0_82, %c0_83], %183 {strides = array<i32>} : memref<2x8x32xf32, #tpu.memory_space<vmem>>, vector<2x8x32xf32>,
    return
  }
  func.func @transform_0(%arg0: i32, %arg1: i32) -> (i32, i32, i32) {
    %c0_i32 = arith.constant 0 : i32
    %c0_i32_0 = arith.constant 0 : i32
    %c0_i32_1 = arith.constant 0 : i32
    return %arg0, %c0_i32, %c0_i32_0 : i32, i32, i32
  }
  func.func @transform_1(%arg0: i32, %arg1: i32) -> (i32, i32, i32) {
    %c0_i32 = arith.constant 0 : i32
    %c0_i32_0 = arith.constant 0 : i32
    %c0_i32_1 = arith.constant 0 : i32
    return %arg1, %c0_i32, %c0_i32_0 : i32, i32, i32
  }
  func.func @transform_2(%arg0: i32, %arg1: i32) -> (i32, i32, i32) {
    %c0_i32 = arith.constant 0 : i32
    %c0_i32_0 = arith.constant 0 : i32
    %c0_i32_1 = arith.constant 0 : i32
    return %arg1, %c0_i32, %c0_i32_0 : i32, i32, i32
  }
  func.func @transform_3(%arg0: i32, %arg1: i32) -> (i32, i32, i32) {
    %c0_i32 = arith.constant 0 : i32
    %c0_i32_0 = arith.constant 0 : i32
    %c0_i32_1 = arith.constant 0 : i32
    return %arg1, %c0_i32, %c0_i32_0 : i32, i32, i32
  }
  func.func @transform_4(%arg0: i32, %arg1: i32) -> (i32, i32, i32) {
    %c0_i32 = arith.constant 0 : i32
    %c0_i32_0 = arith.constant 0 : i32
    %c0_i32_1 = arith.constant 0 : i32
    return %arg1, %c0_i32, %c0_i32_0 : i32, i32, i32
  }
  func.func @transform_5(%arg0: i32, %arg1: i32) -> (i32, i32, i32) {
    %c0_i32 = arith.constant 0 : i32
    %c0_i32_0 = arith.constant 0 : i32
    %c0_i32_1 = arith.constant 0 : i32
    return %arg1, %c0_i32, %c0_i32_0 : i32, i32, i32
  }
  func.func @transform_6(%arg0: i32, %arg1: i32) -> (i32, i32, i32) {
    %c0_i32 = arith.constant 0 : i32
    %c0_i32_0 = arith.constant 0 : i32
    %c0_i32_1 = arith.constant 0 : i32
    return %arg1, %c0_i32, %c0_i32_0 : i32, i32, i32
  }
  func.func @transform_7(%arg0: i32, %arg1: i32) -> (i32, i32, i32) {
    %c0_i32 = arith.constant 0 : i32
    %c0_i32_0 = arith.constant 0 : i32
    %c0_i32_1 = arith.constant 0 : i32
    return %arg1, %c0_i32, %c0_i32_0 : i32, i32, i32
  }
  func.func @transform_8(%arg0: i32, %arg1: i32) -> (i32, i32, i32) {
    %c0_i32 = arith.constant 0 : i32
    %c0_i32_0 = arith.constant 0 : i32
    %c0_i32_1 = arith.constant 0 : i32
    return %arg1, %c0_i32, %c0_i32_0 : i32, i32, i32
  }
  func.func @transform_9(%arg0: i32, %arg1: i32) -> (i32, i32, i32) {
    %c0_i32 = arith.constant 0 : i32
    %c0_i32_0 = arith.constant 0 : i32
    %c0_i32_1 = arith.constant 0 : i32
    return %arg1, %c0_i32, %c0_i32_0 : i32, i32, i32
  }
  func.func @transform_10(%arg0: i32, %arg1: i32) -> (i32, i32, i32) {
    %c0_i32 = arith.constant 0 : i32
    %c0_i32_0 = arith.constant 0 : i32
    %c0_i32_1 = arith.constant 0 : i32
    return %arg1, %c0_i32, %c0_i32_0 : i32, i32, i32
  }
  func.func @transform_11(%arg0: i32, %arg1: i32) -> (i32, i32, i32) {
    %c0_i32 = arith.constant 0 : i32
    %c0_i32_0 = arith.constant 0 : i32
    %c0_i32_1 = arith.constant 0 : i32
    return %arg1, %c0_i32, %c0_i32_0 : i32, i32, i32
  }
  func.func @transform_12(%arg0: i32, %arg1: i32) -> (i32, i32, i32) {
    %c0_i32 = arith.constant 0 : i32
    %c0_i32_0 = arith.constant 0 : i32
    %c0_i32_1 = arith.constant 0 : i32
    return %arg0, %c0_i32, %c0_i32_0 : i32, i32, i32
  }
}

</mosaic_0001>

<bundles_post_ra>
// kernel: _lambda_.1
= control target key start
LH: loop header
LB: loop body
LE: loop exit
PB: predicated region body
PF: predicated region fallthrough
CT: control target
= control target key end

     0   :  { %s3021_s0 = inlined_call_operand.hbm [shape: f32[2,8,32], index: 0, kind: input, shape index: {}, may-alias: {0,12}]   ;;  %s3022_s1 = inlined_call_operand.vmem [shape: f32[2,1,32], index: 1, kind: input, shape index: {}]   ;;  %s3023_s2 = inlined_call_operand.vmem [shape: f32[2,1,32], index: 2, kind: input, shape index: {}]   ;;  %s3024_s3 = inlined_call_operand.vmem [shape: bf16[2,32,96], index: 3, kind: input, shape index: {}]   ;;  %s3025_s4 = inlined_call_operand.vmem [shape: bf16[2,32,32], index: 4, kind: input, shape index: {}]   ;;  %s3026_s5 = inlined_call_operand.vmem [shape: f32[2,1,32], index: 5, kind: input, shape index: {}]   ;;  %s3027_s6 = inlined_call_operand.vmem [shape: f32[2,1,32], index: 6, kind: input, shape index: {}]   ;;  %s3028_s7 = inlined_call_operand.vmem [shape: f32[2,1,32], index: 7, kind: input, shape index: {}]   ;;  %s3029_s8 = inlined_call_operand.vmem [shape: bf16[2,32,64], index: 8, kind: input, shape index: {}]   ;;  %s3030_s9 = inlined_call_operand.vmem [shape: f32[2,1,64], index: 9, kind: input, shape index: {}]   ;;  %s3031_s10 = inlined_call_operand.vmem [shape: bf16[2,64,32], index: 10, kind: input, shape index: {}]   ;;  %s3032_s11 = inlined_call_operand.vmem [shape: f32[2,1,32], index: 11, kind: input, shape index: {}]   ;;  %s3033_s12 = inlined_call_operand.hbm [shape: f32[2,8,32], index: 12, kind: output, shape index: {}, may-alias: {0,12}]  }
   0x1   :  { %3040 = sst [smem:[#allocation11_spill]] %s3021_s0 }
   0x2   :  { %3041 = sst [smem:[#allocation12_spill]] %s3024_s3 }
   0x3   :  { %3042 = sst [smem:[#allocation13_spill]] %s3025_s4 }
   0x4   :  { %3043 = sst [smem:[#allocation14_spill]] %s3033_s12 }
   0x5   :  { %17 = vsyncpa [#allocation4], 0 }
   0x6   :  { %18 = vsyncpa [#allocation5], 0  ;;  %s2633_s21 = smov 0   ;;  %s2635_s22 = smov 0  }
   0x7   :  { %s2637_s23 = smov 0  }
   0x8 LB: > { %3044 = sst [smem:[#allocation9_spill]] %s2541_s22  ;;  %s3037_s24 = sadd.s32 4294967295, %s2545_s23   ;;  %s2545_s23 = sphi %s2637_s23, %s24_s23   ;;  %s2541_s22 = sphi %s2635_s22, %s3062_s22   ;;  %s2537_s21 = sphi %s2633_s21, %s3061_s21  }
   0x9   : > { %s33_s25 = sadd.s32 1, %s2541_s22  ;;  %p2105_p1 = scmp.ge.s32.totalorder %s2545_s23, 1 }
   0xa   : > { %p34_p0 = scmp.ge.s32.totalorder %s33_s25, 2  ;;  %p379_p2 = scmp.lt.s32.totalorder %s2545_s23, 3 }
   0xb   : > { %p2660_p4 = scmp.eq.s32.totalorder %s3037_s24, 0  ;;  %s2547_s28 = smov [#allocation3]  }
   0xc   : > { %s3064_s25 = smov (%p34_p0, %s33_s25), 0  ;;  %p2654_p3 = pnand %p2105_p1, %p379_p2 }
   0xd   : > { %3045 = sst [smem:[#allocation10_spill]] %s3064_s25  ;;  %s394_s29 = sshll.u32 %s2547_s28, 4  ;;  %s395_s29 = int_to_ptr.vmem [resolvable:$true] %s394_s29 }
   0xe   : > { %s3046_s26 = scalar_select %p2654_p3, 1, 0 }
   0xf   : > { %s3047_s27 = scalar_select %p2660_p4, 1, 0 }
  0x10   : > { %p2354_p5 = pneg %p2654_p3  ;;  %s3049_s0 = sld [smem:[#allocation11_spill]] }
  0x12   : > { %p2668_p6 = pnand %p2660_p4, %p2354_p5 }
  0x14   : > { %p2463_p8 = pneg %p2668_p6 }
  0x16   : > { %s2461_s15 = scalar_lea.hbm %s3049_s0, 256 }
  0x17   : > { %p2462_p7 = scmp.ne.s32.totalorder %s3049_s0, %s2461_s15  ;;  %p2468_p11 = scmp.lt.u32.totalorder %s2461_s15, %s3049_s0 }
  0x19   : > { %p2464_p9 = pnand %p2463_p8, %p2462_p7 }
  0x1b   : > { %p2465_p10 = pneg %p2464_p9 }
  0x1d   : > { %p2470_p12 = pnand %p2468_p11, %p2465_p10 }
  0x1f   : > { %2473 = shalt.err (!%p2470_p12)
}
  0x20   : > { %s2474_s20 = scalar_lea.vmem %s395_s29, 256  ;;  %p2482_p2 = scmp.lt.s32.totalorder %s395_s29, %s395_s29 }
  0x21   : > { %p2475_p13 = scmp.ne.s32.totalorder %s395_s29, %s2474_s20  ;;  %p2483_p5 = scmp.lt.s32.totalorder %s2474_s20, %s2474_s20 }
  0x23   : > { %p2477_p0 = pnand %p2475_p13, %p2463_p8  ;;  %p2484_p4 = por %p2483_p5, %p2482_p2 }
  0x25   : > { %p2478_p1 = pneg %p2477_p0 }
  0x27   : > { %p2485_p3 = pnand %p2484_p4, %p2478_p1 }
  0x29   : > { %2488 = shalt.err (!%p2485_p3)
}
  0x2a   : > { %s2548_s28 = smov 128   ;;  %s2549_s13 = smov 8  }
  0x2b   : > { %2357 = dma.hbm_to_vmem [thread:$0]  (!%p2668_p6), %s3049_s0, 256, %s395_s29, [#allocation4], %s2548_s28, %s2548_s28, %s2549_s13  }
  0x2c   : > { %p3050_p7 = scmp.ne.s32.totalorder %s3046_s26, 0 }
  0x2d   : > { %p3051_p9 = scmp.ne.s32.totalorder (!%p3050_p7), %s3047_s27, 0 }
  0x2e   : > { %484 = sbr.rel (%p3050_p7) target bundleno = 4221 (0x107d), region = 68 }
  0x35   : > { %2528 = dma.done.wait (%p3051_p9), [#allocation4], 256  }
  0x36   : > { %2530 = vsyncadd (%p3051_p9), [#allocation4], 4294967040  ;;  %p558_p3 = scmp.lt.s32.totalorder %s2537_s21, 1  ;;  %s3052_s3 = sld [smem:[#allocation12_spill]] }
  0x37   : > { %s3053_s4 = sld [smem:[#allocation13_spill]]  ;;  %p2118_p4 = scmp.ne.s32.totalorder %s2537_s21, 0 }
  0x38   : > { %s2696_s15 = scalar_select %p558_p3, %s2537_s21, 1 }
  0x39   : > { %604 = sbr.rel (%p2118_p4) target bundleno = 64 (0x40), region = 76  ;;  %v605_v0 = vld [vmem:[#allocation3] sm:$0xff] (!%p2118_p4)  ;;  %vm607_vm0 = vcmask (!%p2118_p4), 261120   ;;  %v606_v1 = vld [vmem:[#allocation3 + $0x8] sm:$0xff] (!%p2118_p4) }
  0x3a   : > { %s2162_s19 = sshll.u32 %s2696_s15, 4  ;;  %s582_s22 = scalar_lea.vmem %s3028_s7, %s2696_s15  ;;  %608 = vst.msk [vmem:[#allocation6] sm:$0xff] (!%p2118_p4), %vm607_vm0, %v605_v0  ;;  %609 = vst.msk [vmem:[#allocation6 + $0x8] sm:$0xff] (!%p2118_p4), %vm607_vm0, %v606_v1 }
  0x3b   : > { %s2732_s13 = scalar_lea.vmem %s3029_s8, %s2162_s19  ;;  %s2165_s24 = sshll.u32 %s2696_s15, 5 }
  0x3c   : > { %s2714_s30 = scalar_lea.vmem %s3052_s3, %s2162_s19  ;;  %s590_s3 = scalar_lea.vmem %s3030_s9, %s2696_s15 }
  0x3d   : > { %s2719_s0 = scalar_lea.vmem %s3053_s4, %s2162_s19  ;;  %s598_s12 = scalar_lea.vmem %s3032_s11, %s2696_s15 }
  0x3e   : > { %s2746_s27 = scalar_lea.vmem %s3031_s10, %s2165_s24 }
  0x40 PF: > { %vm614_vm1 = vcmask 261120   ;;  %v2407_v16 = vld [vmem:[%s2714_s30] sm:$0xff]   ;;  %v2550_v17 = vmov 0.0   ;;  %v2408_v18 = vld [vmem:[%s2714_s30 + $0x8] sm:$0xff]   ;;  %vm2551_vm2 = vmmov 0   ;;  %s3054_s18 = scalar_lea.vmem %s3022_s1, %s2696_s15  ;;  %s3055_s29 = scalar_lea.vmem %s3023_s2, %s2696_s15  ;;  %vm727_vm3 = vcmask 64512  }
  0x41   : > { %v2749_v2 = vld [vmem:[#allocation6] sm:$0xff]  ;;  %v2751_v3 = vld [vmem:[#allocation6 + $0x8] sm:$0xff]  ;;  %2214 = vmatprep.subr.bf16.mxu0 %v2550_v17  ;;  %2222 = vmatprep.subr.bf16.mxu1 %v2550_v17  ;;  %s2552_s20 = smov 96   ;;  %s2553_s28 = smov 64   ;;  %vm851_vm4 = vcmask 1043456   ;;  %vm1173_vm5 = vcmask 130112  }
  0x42   : > { %v615_v4 = vsel %vm614_vm1, %v2749_v2, 0.0  ;;  %v618_v5 = vsel %vm614_vm1, %v2751_v3, 0.0  ;;  %2215 = vmatpush3.bf16.msra.mxu0 %v2407_v16  ;;  %2218 = vmatprep.mubr.msk.bf16.mxu0 %vm2551_vm2, %v2550_v17  ;;  %v2119_v27 = vld [vmem:[%s3054_s18] ss:$0 sm:$0xff]  ;;  %s2554_s14 = smov 88   ;;  %s2555_s16 = smov 120  }
  0x43   : > { %616 = vadd.xlane.f32.xlu0 %v615_v4  ;;  %2216 = vmatprep.subr.bf16.mxu0 %v2550_v17  ;;  %v2120_v31 = vld [vmem:[%s3055_s29] ss:$0 sm:$0xff]  ;;  %s2556_s24 = smov 56   ;;  %s2557_s17 = smov 80   ;;  %vm1404_vm6 = vcmask 195712   ;;  %vm1635_vm7 = vcmask 261312  }
  0x44   : > { %2224 = vmatprep.mubr.msk.bf16.mxu1 %vm2551_vm2, %v2550_v17  ;;  %s2558_s25 = smov 112   ;;  %s2559_s26 = smov 48   ;;  %vm1880_vm8 = vcmask 523264  }
  0x45   : > { %s2560_s4 = smov 72   ;;  %s2561_s21 = smov 104  }
  0x46   : > { %2217 = vmatpush3.bf16.msra.mxu0 %v2408_v18  ;;  %s2562_s18 = smov 40   ;;  %s2563_s19 = smov 8  }
  0x47   : > { %619 = vadd.xlane.f32.xlu0 %v618_v5  ;;  %2228 = vmatprep.subr.bf16.mxu0 %v2550_v17  ;;  %s2564_s30 = smov 16   ;;  %s2565_s29 = smov 24  }
  0xd0   : > { %v617_v6 = vpop.xlane.xlu0 %616 }
  0xd1   : > { %v622_v7 = vmul.f32 0.03125, %v617_v6 }
  0xd3   : > { %v624_v8 = vsub.f32 %v2749_v2, %v622_v7 }
  0xd4   : > { %v620_v9 = vpop.xlane.xlu0 %619 }
  0xd5   : > { %v623_v10 = vmul.f32 0.03125, %v620_v9  ;;  %v626_v11 = vmul.f32 %v624_v8, %v624_v8 }
  0xd7   : > { %v625_v12 = vsub.f32 %v2751_v3, %v623_v10  ;;  %v628_v13 = vsel %vm614_vm1, %v626_v11, 0.0 }
  0xd8   : > { %629 = vadd.xlane.f32.xlu1 %v628_v13 }
  0xd9   : > { %v627_v14 = vmul.f32 %v625_v12, %v625_v12 }
  0xdb   : > { %v631_v15 = vsel %vm614_vm1, %v627_v14, 0.0 }
  0xdc   : > { %632 = vadd.xlane.f32.xlu1 %v631_v15 }
 0x165   : > { %v630_v19 = vpop.xlane.xlu1 %629 }
 0x166   : > { %v634_v20 = vmul.f32 0.03125, %v630_v19 }
 0x168   : > { %v636_v21 = vadd.f32 1e-05, %v634_v20 }
 0x169   : > { %v633_v22 = vpop.xlane.xlu1 %632 }
 0x16a   : > { %2417 = vrsqrt.f32 %v636_v21  ;;  %v635_v23 = vmul.f32 0.03125, %v633_v22 }
 0x16c   : > { %v637_v24 = vadd.f32 1e-05, %v635_v23 }
 0x16e   : > { %2419 = vrsqrt.f32 %v637_v24 }
 0x174   : > { %v2418_v25 = vpop.eup %2417 }
 0x175   : > { %v640_v26 = vmul.f32 %v2418_v25, %v624_v8 }
 0x177   : > { %v648_v30 = vmul.f32 %v2119_v27, %v640_v26 }
 0x178   : > { %v2420_v28 = vpop.eup %2419 }
 0x179   : > { %v641_v29 = vmul.f32 %v2420_v28, %v625_v12  ;;  %v656_v33 = vadd.f32 %v2120_v31, %v648_v30 }
 0x17b   : > { %v649_v32 = vmul.f32 %v2119_v27, %v641_v29 }
 0x17d   : > { %v657_v34 = vadd.f32 %v2120_v31, %v649_v32 }
 0x17f   : > { %v658_v35 = vpack.c.bf16 %v657_v34, %v656_v33 }
 0x181   : > { %2219 = vmatmul.mubr.msk.bf16.vlgmr.msra.gmra.mrb[0].mxu0 %vm614_vm1, %v658_v35 }
 0x182   : > { %2230 = vmatprep.mubr.msk.bf16.mxu0 %vm2551_vm2, %v2550_v17 }
 0x254   : > { %v712_v36 = vpop.f32.mrb[0].mxu0 }
 0x255   : > { %v2784_v37 = vpack.c.bf16 %v712_v36, %v712_v36  ;;  %v2220_v38 = vpop.f32.mrb[1].mxu0 }
 0x256   : > { %v715_v39 = vpop.f32.mrb[2].mxu0 }
 0x257   : > { %v2786_v40 = vpack.c.bf16 %v715_v39, %v715_v39  ;;  %725 = vrot.lane.b32.xlu0 %v2784_v37, %s2552_s20  ;;  %v2221_v41 = vpop.f32.mrb[3].mxu0 }
 0x259   : > { %774 = vrot.lane.b32.xlu1 %v2786_v40, %s2552_s20 }
 0x2c9   : > { %v726_v42 = vpop.permute.xlu0 %725 }
 0x2ca   : > { %v732_v43 = vsel %vm727_vm3, %v726_v42, 0 }
 0x2cb   : > { %2223 = vmatpush3.bf16.xpose.msra.mxu1 %v732_v43  ;;  %v775_v44 = vpop.permute.xlu1 %774 }
 0x2cc   : > { %v780_v45 = vsel %vm727_vm3, %v775_v44, 0  ;;  %2234 = vmatprep.subr.bf16.mxu1 %v2550_v17 }
 0x2cd   : > { %2229 = vmatpush3.bf16.xpose.msra.mxu0 %v780_v45 }
 0x2ce   : > { %2240 = vmatprep.subr.bf16.mxu0 %v2550_v17 }
 0x2d2   : > { %2225 = vmatmul.mubr.msk.bf16.vlgmr.msra.gmra.mrb[0].mxu1 %vm727_vm3, %v2784_v37 }
 0x2d3   : > { %2236 = vmatprep.mubr.msk.bf16.mxu1 %vm2551_vm2, %v2550_v17 }
 0x2d4   : > { %2231 = vmatmul.mubr.msk.bf16.vlgmr.msra.gmra.mrb[4].mxu0 %vm727_vm3, %v2786_v40 }
 0x2d5   : > { %2242 = vmatprep.mubr.msk.bf16.mxu0 %vm2551_vm2, %v2550_v17 }
 0x3a5   : > { %v768_v46 = vpop.f32.mrb[0].mxu1 }
 0x3a6   : > { %v2226_v47 = vpop.f32.mrb[1].mxu1  ;;  %v822_v48 = vsel %vm727_vm3, %v768_v46, -inf }
 0x3a7   : > { %v771_v49 = vpop.f32.mrb[2].mxu1  ;;  %823 = vmax.xlane.f32.xlu1 %v822_v48  ;;  %v816_v50 = vpop.f32.mrb[4].mxu0 }
 0x3a8   : > { %v2227_v51 = vpop.f32.mrb[3].mxu1  ;;  %v2232_v52 = vpop.f32.mrb[5].mxu0  ;;  %v825_v53 = vsel %vm727_vm3, %v816_v50, -inf }
 0x3a9   : > { %826 = vmax.xlane.f32.xlu0 %v825_v53  ;;  %v819_v54 = vpop.f32.mrb[6].mxu0 }
 0x3aa   : > { %v2233_v55 = vpop.f32.mrb[7].mxu0 }
 0x3b8   : > { %895 = vrot.lane.b32.xlu1 %v2786_v40, %s2553_s28 }
 0x3bc   : > { %947 = vrot.lane.b32.xlu1 %v2784_v37, %s2554_s14 }
 0x434   : > { %v824_v56 = vpop.xlane.xlu1 %823 }
 0x435   : > { %v828_v57 = vsub.f32 %v768_v46, %v824_v56 }
 0x436   : > { %v827_v58 = vpop.xlane.xlu0 %826 }
 0x437   : > { %v830_v59 = vmul.f32 1.442695, %v828_v57  ;;  %v829_v60 = vsub.f32 %v816_v50, %v827_v58 }
 0x438   : > { %v896_v61 = vpop.permute.xlu1 %895 }
 0x439   : > { %2421 = vpow2.f32 %v830_v59  ;;  %v832_v62 = vmul.f32 1.442695, %v829_v60  ;;  %v901_v63 = vsel %vm851_vm4, %v896_v61, 0 }
 0x43a   : > { %2241 = vmatpush3.bf16.msra.mxu0 %v901_v63 }
 0x43b   : > { %2423 = vpow2.f32 %v832_v62  ;;  %2252 = vmatprep.subr.bf16.mxu0 %v2550_v17 }
 0x43c   : > { %v948_v6 = vpop.permute.xlu1 %947 }
 0x43d   : > { %v953_v18 = vsel %vm727_vm3, %v948_v6, 0 }
 0x443   : > { %v2422_v0 = vpop.eup %2421 }
 0x444   : > { %v834_v1 = vsel %vm727_vm3, %v2422_v0, 0.0 }
 0x445   : > { %v2424_v4 = vpop.eup %2423  ;;  %835 = vadd.xlane.f32.xlu0 %v834_v1 }
 0x446   : > { %v837_v5 = vsel %vm727_vm3, %v2424_v4, 0.0 }
 0x447   : > { %838 = vadd.xlane.f32.xlu1 %v837_v5 }
 0x458   : > { %997 = vrot.lane.b32.xlu1 %v2786_v40, %s2554_s14 }
 0x45b   : > { %846 = vrot.lane.b32.xlu0 %v2784_v37, %s2553_s28  ;;  %s3056_s28 = scalar_lea.vmem %s3026_s5, %s2696_s15 }
 0x45c   : > { %995 = vrot.lane.b32.xlu1 %v2786_v40, %s2555_s16 }
 0x45f   : > { %945 = vrot.lane.b32.xlu0 %v2784_v37, %s2555_s16 }
 0x4d2   : > { %v836_v7 = vpop.xlane.xlu0 %835 }
 0x4d3   : > { %2425 = vrcp.f32 %v836_v7 }
 0x4d4   : > { %v839_v8 = vpop.xlane.xlu1 %838 }
 0x4d5   : > { %2427 = vrcp.f32 %v839_v8 }
 0x4d6   : > { %v847_v9 = vpop.permute.xlu0 %846 }
 0x4d7   : > { %v853_v10 = vsel %vm851_vm4, %v847_v9, 0 }
 0x4d8   : > { %2235 = vmatpush3.bf16.msra.mxu1 %v853_v10  ;;  %v998_v16 = vpop.permute.xlu1 %997 }
 0x4d9   : > { %2246 = vmatprep.subr.bf16.mxu1 %v2550_v17  ;;  %v1003_v20 = vsel %vm727_vm3, %v998_v16, 0 }
 0x4da   : > { %v946_v21 = vpop.permute.xlu0 %945 }
 0x4dc   : > { %v996_v22 = vpop.permute.xlu1 %995 }
 0x4dd   : > { %v2426_v11 = vpop.eup %2425 }
 0x4de   : > { %v842_v12 = vmul.f32 %v2426_v11, %v2422_v0 }
 0x4df   : > { %v2428_v13 = vpop.eup %2427 }
 0x4e0   : > { %v843_v14 = vmul.f32 %v2428_v13, %v2424_v4  ;;  %v844_v15 = vpack.c.bf16 %v842_v12, %v842_v12 }
 0x4e2   : > { %2237 = vmatmul.mubr.msk.bf16.vlgmr.msra.gmra.mrb[4].mxu1 %vm727_vm3, %v844_v15  ;;  %v845_v19 = vpack.c.bf16 %v843_v14, %v843_v14 }
 0x4e3   : > { %2247 = vmatpush3.bf16.xpose.msra.mxu1 %v953_v18  ;;  %2248 = vmatprep.mubr.msk.bf16.mxu1 %vm2551_vm2, %v2550_v17 }
 0x4e4   : > { %2243 = vmatmul.mubr.msk.bf16.vlgmr.msra.gmra.mrb[8].mxu0 %vm727_vm3, %v845_v19  ;;  %2258 = vmatprep.subr.bf16.mxu1 %v2550_v17 }
 0x4e5   : > { %2253 = vmatpush3.bf16.xpose.msra.mxu0 %v1003_v20  ;;  %2254 = vmatprep.mubr.msk.bf16.mxu0 %vm2551_vm2, %v2550_v17 }
 0x4e6   : > { %2264 = vmatprep.subr.bf16.mxu0 %v2550_v17 }
 0x4ea   : > { %2249 = vmatmul.mubr.msk.bf16.vlgmr.msra.gmra.mrb[8].mxu1 %vm727_vm3, %v946_v21 }
 0x4eb   : > { %2260 = vmatprep.mubr.msk.bf16.mxu1 %vm2551_vm2, %v2550_v17 }
 0x4ec   : > { %2255 = vmatmul.mubr.msk.bf16.vlgmr.msra.gmra.mrb[12].mxu0 %vm727_vm3, %v996_v22 }
 0x4ed   : > { %2266 = vmatprep.mubr.msk.bf16.mxu0 %vm2551_vm2, %v2550_v17 }
 0x5b5   : > { %v889_v23 = vpop.f32.mrb[4].mxu1 }
 0x5b6   : > { %943 = vst.msk [vmem:[#allocation2] sm:$0xff] %vm727_vm3, %v889_v23  ;;  %v2238_v24 = vpop.f32.mrb[5].mxu1 }
 0x5b7   : > { %v892_v25 = vpop.f32.mrb[6].mxu1  ;;  %v937_v26 = vpop.f32.mrb[8].mxu0 }
 0x5b8   : > { %944 = vst.msk [vmem:[#allocation2 + $0x8] sm:$0xff] %vm727_vm3, %v937_v26  ;;  %v2239_v27 = vpop.f32.mrb[7].mxu1  ;;  %v2244_v28 = vpop.f32.mrb[9].mxu0 }
 0x5b9   : > { %v940_v29 = vpop.f32.mrb[10].mxu0 }
 0x5ba   : > { %v2245_v30 = vpop.f32.mrb[11].mxu0 }
 0x5bd   : > { %v989_v31 = vpop.f32.mrb[8].mxu1 }
 0x5be   : > { %v2250_v32 = vpop.f32.mrb[9].mxu1  ;;  %v1045_v33 = vsel %vm727_vm3, %v989_v31, -inf }
 0x5bf   : > { %1046 = vmax.xlane.f32.xlu0 %v1045_v33  ;;  %v992_v34 = vpop.f32.mrb[10].mxu1  ;;  %v1039_v35 = vpop.f32.mrb[12].mxu0 }
 0x5c0   : > { %v2251_v36 = vpop.f32.mrb[11].mxu1  ;;  %v2256_v38 = vpop.f32.mrb[13].mxu0  ;;  %v1048_v39 = vsel %vm727_vm3, %v1039_v35, -inf }
 0x5c1   : > { %1049 = vmax.xlane.f32.xlu1 %v1048_v39  ;;  %v1042_v41 = vpop.f32.mrb[14].mxu0 }
 0x5c2   : > { %v2257_v42 = vpop.f32.mrb[15].mxu0 }
 0x5d2   : > { %1117 = vrot.lane.b32.xlu1 %v2786_v40, %s2556_s24 }
 0x5d6   : > { %1178 = vrot.lane.b32.xlu1 %v2784_v37, %s2557_s17 }
 0x5da   : > { %1228 = vrot.lane.b32.xlu1 %v2786_v40, %s2557_s17 }
 0x5de   : > { %1226 = vrot.lane.b32.xlu1 %v2786_v40, %s2558_s25 }
 0x64c   : > { %v1047_v43 = vpop.xlane.xlu0 %1046 }
 0x64d   : > { %v1051_v44 = vsub.f32 %v989_v31, %v1047_v43 }
 0x64e   : > { %v1050_v45 = vpop.xlane.xlu1 %1049 }
 0x64f   : > { %v1053_v46 = vmul.f32 1.442695, %v1051_v44  ;;  %v1052_v47 = vsub.f32 %v1039_v35, %v1050_v45 }
 0x651   : > { %2429 = vpow2.f32 %v1053_v46  ;;  %v1055_v48 = vmul.f32 1.442695, %v1052_v47 }
 0x652   : > { %v1118_v49 = vpop.permute.xlu1 %1117 }
 0x653   : > { %2431 = vpow2.f32 %v1055_v48  ;;  %v1123_v50 = vsel %vm851_vm4, %v1118_v49, 0 }
 0x654   : > { %2265 = vmatpush3.bf16.msra.mxu0 %v1123_v50 }
 0x655   : > { %2276 = vmatprep.subr.bf16.mxu0 %v2550_v17 }
 0x656   : > { %v1179_v60 = vpop.permute.xlu1 %1178 }
 0x657   : > { %v1184_v4 = vsel %vm727_vm3, %v1179_v60, 0 }
 0x65a   : > { %v1229_v1 = vpop.permute.xlu1 %1228 }
 0x65b   : > { %v2430_v51 = vpop.eup %2429  ;;  %v1234_v6 = vsel %vm727_vm3, %v1229_v1, 0 }
 0x65c   : > { %v1057_v52 = vsel %vm727_vm3, %v2430_v51, 0.0 }
 0x65d   : > { %v2432_v53 = vpop.eup %2431  ;;  %1058 = vadd.xlane.f32.xlu0 %v1057_v52 }
 0x65e   : > { %v1060_v54 = vsel %vm727_vm3, %v2432_v53, 0.0  ;;  %v1227_v8 = vpop.permute.xlu1 %1226 }
 0x661   : > { %1061 = vadd.xlane.f32.xlu0 %v1060_v54 }
 0x677   : > { %1069 = vrot.lane.b32.xlu0 %v2784_v37, %s2556_s24 }
 0x67b   : > { %1176 = vrot.lane.b32.xlu0 %v2784_v37, %s2558_s25 }
 0x6ea   : > { %v1059_v55 = vpop.xlane.xlu0 %1058 }
 0x6eb   : > { %2433 = vrcp.f32 %v1059_v55 }
 0x6ee   : > { %v1062_v56 = vpop.xlane.xlu0 %1061 }
 0x6ef   : > { %2435 = vrcp.f32 %v1062_v56 }
 0x6f2   : > { %v1070_v57 = vpop.permute.xlu0 %1069 }
 0x6f3   : > { %v1075_v58 = vsel %vm851_vm4, %v1070_v57, 0 }
 0x6f4   : > { %2259 = vmatpush3.bf16.msra.mxu1 %v1075_v58 }
 0x6f5   : > { %v2434_v59 = vpop.eup %2433  ;;  %2270 = vmatprep.subr.bf16.mxu1 %v2550_v17 }
 0x6f6   : > { %v1065_v61 = vmul.f32 %v2434_v59, %v2430_v51  ;;  %v1177_v7 = vpop.permute.xlu0 %1176 }
 0x6f8   : > { %v1067_v62 = vpack.c.bf16 %v1065_v61, %v1065_v61 }
 0x6f9   : > { %v2436_v63 = vpop.eup %2435 }
 0x6fa   : > { %v1066_v0 = vmul.f32 %v2436_v63, %v2432_v53  ;;  %2261 = vmatmul.mubr.msk.bf16.vlgmr.msra.gmra.mrb[12].mxu1 %vm727_vm3, %v1067_v62 }
 0x6fb   : > { %2272 = vmatprep.mubr.msk.bf16.mxu1 %vm2551_vm2, %v2550_v17 }
 0x6fc   : > { %v1068_v5 = vpack.c.bf16 %v1066_v0, %v1066_v0 }
 0x6fd   : > { %2271 = vmatpush3.bf16.xpose.msra.mxu1 %v1184_v4 }
 0x6fe   : > { %2267 = vmatmul.mubr.msk.bf16.vlgmr.msra.gmra.mrb[16].mxu0 %vm727_vm3, %v1068_v5  ;;  %2282 = vmatprep.subr.bf16.mxu1 %v2550_v17 }
 0x6ff   : > { %2277 = vmatpush3.bf16.xpose.msra.mxu0 %v1234_v6  ;;  %2278 = vmatprep.mubr.msk.bf16.mxu0 %vm2551_vm2, %v2550_v17 }
 0x700   : > { %2288 = vmatprep.subr.bf16.mxu0 %v2550_v17 }
 0x704   : > { %2273 = vmatmul.mubr.msk.bf16.vlgmr.msra.gmra.mrb[16].mxu1 %vm727_vm3, %v1177_v7 }
 0x705   : > { %2284 = vmatprep.mubr.msk.bf16.mxu1 %vm2551_vm2, %v2550_v17 }
 0x706   : > { %2279 = vmatmul.mubr.msk.bf16.vlgmr.msra.gmra.mrb[20].mxu0 %vm727_vm3, %v1227_v8 }
 0x707   : > { %2290 = vmatprep.mubr.msk.bf16.mxu0 %vm2551_vm2, %v2550_v17 }
 0x7cd   : > { %v2864_v9 = vpop.f32.mrb[12].mxu1 }
 0x7ce   : > { %v2262_v10 = vpop.f32.mrb[13].mxu1 }
 0x7cf   : > { %v1114_v11 = vpop.f32.mrb[14].mxu1 }
 0x7d0   : > { %v2263_v12 = vpop.f32.mrb[15].mxu1 }
 0x7d1   : > { %v2866_v13 = vpop.f32.mrb[16].mxu0 }
 0x7d2   : > { %v2268_v14 = vpop.f32.mrb[17].mxu0 }
 0x7d3   : > { %v1162_v15 = vpop.f32.mrb[18].mxu0 }
 0x7d4   : > { %v2269_v16 = vpop.f32.mrb[19].mxu0 }
 0x7d7   : > { %v1220_v18 = vpop.f32.mrb[16].mxu1 }
 0x7d8   : > { %v2274_v19 = vpop.f32.mrb[17].mxu1  ;;  %v1276_v20 = vsel %vm727_vm3, %v1220_v18, -inf }
 0x7d9   : > { %1277 = vmax.xlane.f32.xlu0 %v1276_v20  ;;  %v1223_v21 = vpop.f32.mrb[18].mxu1  ;;  %v1270_v22 = vpop.f32.mrb[20].mxu0 }
 0x7da   : > { %v2275_v23 = vpop.f32.mrb[19].mxu1  ;;  %v2280_v24 = vpop.f32.mrb[21].mxu0  ;;  %v1279_v25 = vsel %vm727_vm3, %v1270_v22, -inf }
 0x7db   : > { %1280 = vmax.xlane.f32.xlu1 %v1279_v25  ;;  %v1273_v26 = vpop.f32.mrb[22].mxu0 }
 0x7dc   : > { %v2281_v27 = vpop.f32.mrb[23].mxu0 }
 0x7ec   : > { %1348 = vrot.lane.b32.xlu1 %v2786_v40, %s2559_s26 }
 0x7f0   : > { %1409 = vrot.lane.b32.xlu1 %v2784_v37, %s2560_s4 }
 0x7f4   : > { %1459 = vrot.lane.b32.xlu1 %v2786_v40, %s2560_s4 }
 0x7f8   : > { %1457 = vrot.lane.b32.xlu1 %v2786_v40, %s2561_s21 }
 0x866   : > { %v1278_v28 = vpop.xlane.xlu0 %1277 }
 0x867   : > { %v1282_v29 = vsub.f32 %v1220_v18, %v1278_v28 }
 0x868   : > { %v1281_v30 = vpop.xlane.xlu1 %1280 }
 0x869   : > { %v1284_v31 = vmul.f32 1.442695, %v1282_v29  ;;  %v1283_v32 = vsub.f32 %v1270_v22, %v1281_v30 }
 0x86b   : > { %2437 = vpow2.f32 %v1284_v31  ;;  %v1286_v33 = vmul.f32 1.442695, %v1283_v32 }
 0x86c   : > { %v1349_v34 = vpop.permute.xlu1 %1348 }
 0x86d   : > { %2439 = vpow2.f32 %v1286_v33  ;;  %v1354_v35 = vsel %vm851_vm4, %v1349_v34, 0 }
 0x86e   : > { %2289 = vmatpush3.bf16.msra.mxu0 %v1354_v35 }
 0x86f   : > { %2300 = vmatprep.subr.bf16.mxu0 %v2550_v17 }
 0x870   : > { %v1410_v47 = vpop.permute.xlu1 %1409 }
 0x871   : > { %v1415_v53 = vsel %vm727_vm3, %v1410_v47, 0 }
 0x874   : > { %v1460_v52 = vpop.permute.xlu1 %1459 }
 0x875   : > { %v2438_v36 = vpop.eup %2437  ;;  %v1465_v55 = vsel %vm727_vm3, %v1460_v52, 0 }
 0x876   : > { %v1288_v38 = vsel %vm727_vm3, %v2438_v36, 0.0 }
 0x877   : > { %v2440_v39 = vpop.eup %2439  ;;  %1289 = vadd.xlane.f32.xlu0 %v1288_v38 }
 0x878   : > { %v1291_v41 = vsel %vm727_vm3, %v2440_v39, 0.0  ;;  %v1458_v57 = vpop.permute.xlu1 %1457 }
 0x87b   : > { %1292 = vadd.xlane.f32.xlu0 %v1291_v41  ;;  %v2409_v41 = vld [vmem:[%s2719_s0] sm:$0xff]  }
 0x891   : > { %1300 = vrot.lane.b32.xlu0 %v2784_v37, %s2559_s26  ;;  %s2566_s26 = smov [#allocation6]  }
 0x892   : > { %s1938_s4 = sshll.u32 %s2566_s26, 4  ;;  %s1939_s4 = int_to_ptr.vmem [resolvable:$true] %s1938_s4 }
 0x893   : > { %p2496_p12 = scmp.lt.s32.totalorder %s1939_s4, %s1939_s4 }
 0x895   : > { %1407 = vrot.lane.b32.xlu0 %v2784_v37, %s2561_s21  ;;  %s3058_s21 = sadd.s32 4294967295, %s2545_s23  }
 0x896   : > { %p2982_p6 = scmp.eq.s32.totalorder %s3058_s21, 1 }
 0x904   : > { %v1290_v42 = vpop.xlane.xlu0 %1289 }
 0x905   : > { %2441 = vrcp.f32 %v1290_v42  ;;  %v2410_v42 = vld [vmem:[%s2719_s0 + $0x8] sm:$0xff]  }
 0x908   : > { %v1293_v43 = vpop.xlane.xlu0 %1292 }
 0x909   : > { %2443 = vrcp.f32 %v1293_v43 }
 0x90c   : > { %v1301_v44 = vpop.permute.xlu0 %1300 }
 0x90d   : > { %v1306_v45 = vsel %vm851_vm4, %v1301_v44, 0 }
 0x90e   : > { %2283 = vmatpush3.bf16.msra.mxu1 %v1306_v45 }
 0x90f   : > { %v2442_v46 = vpop.eup %2441  ;;  %2294 = vmatprep.subr.bf16.mxu1 %v2550_v17 }
 0x910   : > { %v1296_v48 = vmul.f32 %v2442_v46, %v2438_v36  ;;  %v1408_v56 = vpop.permute.xlu0 %1407 }
 0x912   : > { %v1298_v49 = vpack.c.bf16 %v1296_v48, %v1296_v48 }
 0x913   : > { %v2444_v50 = vpop.eup %2443 }
 0x914   : > { %v1297_v51 = vmul.f32 %v2444_v50, %v2440_v39  ;;  %2285 = vmatmul.mubr.msk.bf16.vlgmr.msra.gmra.mrb[20].mxu1 %vm727_vm3, %v1298_v49 }
 0x915   : > { %2296 = vmatprep.mubr.msk.bf16.mxu1 %vm2551_vm2, %v2550_v17 }
 0x916   : > { %v1299_v54 = vpack.c.bf16 %v1297_v51, %v1297_v51 }
 0x917   : > { %2295 = vmatpush3.bf16.xpose.msra.mxu1 %v1415_v53 }
 0x918   : > { %2291 = vmatmul.mubr.msk.bf16.vlgmr.msra.gmra.mrb[24].mxu0 %vm727_vm3, %v1299_v54  ;;  %2306 = vmatprep.subr.bf16.mxu1 %v2550_v17 }
 0x919   : > { %2301 = vmatpush3.bf16.xpose.msra.mxu0 %v1465_v55  ;;  %2302 = vmatprep.mubr.msk.bf16.mxu0 %vm2551_vm2, %v2550_v17 }
 0x91a   : > { %2312 = vmatprep.subr.bf16.mxu0 %v2550_v17 }
 0x91e   : > { %2297 = vmatmul.mubr.msk.bf16.vlgmr.msra.gmra.mrb[24].mxu1 %vm727_vm3, %v1408_v56  ;;  %v2142_v56 = vld [vmem:[%s3056_s28] ss:$0 sm:$0xff] }
 0x91f   : > { %2308 = vmatprep.mubr.msk.bf16.mxu1 %vm2551_vm2, %v2550_v17 }
 0x920   : > { %2303 = vmatmul.mubr.msk.bf16.vlgmr.msra.gmra.mrb[28].mxu0 %vm727_vm3, %v1458_v57 }
 0x921   : > { %2314 = vmatprep.mubr.msk.bf16.mxu0 %vm2551_vm2, %v2550_v17 }
 0x9e7   : > { %v1342_v58 = vpop.f32.mrb[20].mxu1 }
 0x9e8   : > { %v2286_v59 = vpop.f32.mrb[21].mxu1 }
 0x9e9   : > { %v1345_v60 = vpop.f32.mrb[22].mxu1 }
 0x9ea   : > { %v2287_v61 = vpop.f32.mrb[23].mxu1 }
 0x9eb   : > { %v1390_v62 = vpop.f32.mrb[24].mxu0 }
 0x9ec   : > { %v2292_v63 = vpop.f32.mrb[25].mxu0 }
 0x9ed   : > { %v1393_v0 = vpop.f32.mrb[26].mxu0 }
 0x9ee   : > { %v2293_v1 = vpop.f32.mrb[27].mxu0 }
 0x9f1   : > { %v1451_v4 = vpop.f32.mrb[24].mxu1 }
 0x9f2   : > { %v2298_v5 = vpop.f32.mrb[25].mxu1  ;;  %v1507_v6 = vsel %vm727_vm3, %v1451_v4, -inf }
 0x9f3   : > { %1508 = vmax.xlane.f32.xlu0 %v1507_v6  ;;  %v1454_v7 = vpop.f32.mrb[26].mxu1  ;;  %v1501_v8 = vpop.f32.mrb[28].mxu0 }
 0x9f4   : > { %v2299_v10 = vpop.f32.mrb[27].mxu1  ;;  %v2304_v11 = vpop.f32.mrb[29].mxu0  ;;  %v1510_v12 = vsel %vm727_vm3, %v1501_v8, -inf }
 0x9f5   : > { %1511 = vmax.xlane.f32.xlu1 %v1510_v12  ;;  %v1504_v14 = vpop.f32.mrb[30].mxu0 }
 0x9f6   : > { %v2305_v15 = vpop.f32.mrb[31].mxu0 }
 0x9f7   : > { %v2411_v15 = vld [vmem:[%s2732_s13] sm:$0xff]  }
 0xa06   : > { %1579 = vrot.lane.b32.xlu1 %v2786_v40, %s2562_s18 }
 0xa0a   : > { %1167 = vrot.lane.b32.xlu1 %v2864_v9, %s2563_s19 }
 0xa0e   : > { %1169 = vrot.lane.b32.xlu1 %v2866_v13, %s2563_s19 }
 0xa12   : > { %1400 = vrot.lane.b32.xlu1 %v1390_v62, %s2564_s30 }
 0xa80   : > { %v1509_v16 = vpop.xlane.xlu0 %1508 }
 0xa81   : > { %v1513_v18 = vsub.f32 %v1451_v4, %v1509_v16  ;;  %v2412_v16 = vld [vmem:[%s2732_s13 + $0x8] sm:$0xff]   ;;  %s3057_s13 = scalar_lea.vmem %s3027_s6, %s2696_s15 }
 0xa82   : > { %v1512_v19 = vpop.xlane.xlu1 %1511 }
 0xa83   : > { %v1515_v20 = vmul.f32 1.442695, %v1513_v18  ;;  %v1514_v21 = vsub.f32 %v1501_v8, %v1512_v19 }
 0xa85   : > { %2445 = vpow2.f32 %v1515_v20  ;;  %v1517_v22 = vmul.f32 1.442695, %v1514_v21 }
 0xa86   : > { %v1580_v23 = vpop.permute.xlu1 %1579 }
 0xa87   : > { %2447 = vpow2.f32 %v1517_v22  ;;  %v1585_v40 = vsel %vm851_vm4, %v1580_v23, 0 }
 0xa88   : > { %2313 = vmatpush3.bf16.msra.mxu0 %v1585_v40 }
 0xa89   : > { %2326 = vmatprep.subr.bf16.mxu0 %v2550_v17 }
 0xa8a   : > { %v1168_v9 = vpop.permute.xlu1 %1167 }
 0xa8b   : > { %1174 = vst.msk [vmem:[#allocation2] sm:$0xff] %vm1173_vm5, %v1168_v9 }
 0xa8e   : > { %v1170_v13 = vpop.permute.xlu1 %1169 }
 0xa8f   : > { %v2446_v24 = vpop.eup %2445  ;;  %1175 = vst.msk [vmem:[#allocation2 + $0x8] sm:$0xff] %vm1173_vm5, %v1170_v13  ;;  %v2146_v13 = vld [vmem:[%s3057_s13] ss:$0 sm:$0xff] }
 0xa90   : > { %v1519_v25 = vsel %vm727_vm3, %v2446_v24, 0.0 }
 0xa91   : > { %v2448_v26 = vpop.eup %2447  ;;  %1520 = vadd.xlane.f32.xlu0 %v1519_v25 }
 0xa92   : > { %v1401_v27 = vpop.permute.xlu1 %1400  ;;  %v1522_v28 = vsel %vm727_vm3, %v2448_v26, 0.0 }
 0xa93   : > { %1406 = vst.msk [vmem:[#allocation2 + $0x8] sm:$0xff] %vm1404_vm6, %v1401_v27  ;;  %v2147_v27 = vld [vmem:[%s582_s22] ss:$0 sm:$0xff] }
 0xa95   : > { %1523 = vadd.xlane.f32.xlu0 %v1522_v28 }
 0xaab   : > { %1531 = vrot.lane.b32.xlu0 %v2784_v37, %s2562_s18 }
 0xaaf   : > { %1398 = vrot.lane.b32.xlu0 %v1342_v58, %s2564_s30 }
 0xb1e   : > { %v1521_v29 = vpop.xlane.xlu0 %1520 }
 0xb1f   : > { %2449 = vrcp.f32 %v1521_v29 }
 0xb22   : > { %v1524_v30 = vpop.xlane.xlu0 %1523 }
 0xb23   : > { %2451 = vrcp.f32 %v1524_v30 }
 0xb26   : > { %v1532_v31 = vpop.permute.xlu0 %1531 }
 0xb27   : > { %v1537_v32 = vsel %vm851_vm4, %v1532_v31, 0 }
 0xb28   : > { %2307 = vmatpush3.bf16.msra.mxu1 %v1537_v32  ;;  %v2413_v32 = vld [vmem:[%s2746_s27] sm:$0xff]  }
 0xb29   : > { %v2450_v33 = vpop.eup %2449  ;;  %2318 = vmatprep.subr.bf16.mxu1 %v2550_v17 }
 0xb2a   : > { %v1527_v34 = vmul.f32 %v2450_v33, %v2446_v24  ;;  %v1399_v35 = vpop.permute.xlu0 %1398  ;;  %v2414_v33 = vld [vmem:[%s2746_s27 + $0x8] sm:$0xff]  }
 0xb2b   : > { %1405 = vst.msk [vmem:[#allocation2] sm:$0xff] %vm1404_vm6, %v1399_v35  ;;  %v2416_v35 = vld [vmem:[%s2746_s27 + $0x18] sm:$0xff]  }
 0xb2c   : > { %v1529_v36 = vpack.c.bf16 %v1527_v34, %v1527_v34  ;;  %v2415_v34 = vld [vmem:[%s2746_s27 + $0x10] sm:$0xff]  }
 0xb2d   : > { %v2452_v37 = vpop.eup %2451 }
 0xb2e   : > { %v1528_v38 = vmul.f32 %v2452_v37, %v2448_v26  ;;  %2309 = vmatmul.mubr.msk.bf16.vlgmr.msra.gmra.mrb[28].mxu1 %vm727_vm3, %v1529_v36  ;;  %v2148_v36 = vld [vmem:[%s590_s3] ss:$0 sm:$0xff] }
 0xb2f   : > { %2322 = vmatprep.mubr.msk.bf16.mxu1 %vm2551_vm2, %v2550_v17  ;;  %2319 = vmatpush3.bf16.msra.mxu1 %v2409_v41 }
 0xb30   : > { %v1530_v39 = vpack.c.bf16 %v1528_v38, %v1528_v38  ;;  %2320 = vmatprep.subr.bf16.mxu1 %v2550_v17 }
 0xb32   : > { %2315 = vmatmul.mubr.msk.bf16.vlgmr.msra.gmra.mrb[32].mxu0 %vm727_vm3, %v1530_v39 }
 0xb33   : > { %2330 = vmatprep.mubr.msk.bf16.mxu0 %vm2551_vm2, %v2550_v17  ;;  %2321 = vmatpush3.bf16.msra.mxu1 %v2410_v42 }
 0xb34   : > { %2334 = vmatprep.subr.bf16.mxu1 %v2550_v17  ;;  %2327 = vmatpush3.bf16.msra.mxu0 %v2411_v15 }
 0xb35   : > { %2328 = vmatprep.subr.bf16.mxu0 %v2550_v17 }
 0xb38   : > { %2329 = vmatpush3.bf16.msra.mxu0 %v2412_v16 }
 0xc01   : > { %v1573_v43 = vpop.f32.mrb[28].mxu1 }
 0xc02   : > { %1629 = vrot.lane.b32.xlu0 %v1573_v43, %s2565_s29  ;;  %v2310_v44 = vpop.f32.mrb[29].mxu1 }
 0xc03   : > { %v1576_v45 = vpop.f32.mrb[30].mxu1 }
 0xc04   : > { %v2311_v46 = vpop.f32.mrb[31].mxu1 }
 0xc05   : > { %v1621_v47 = vpop.f32.mrb[32].mxu0 }
 0xc06   : > { %1631 = vrot.lane.b32.xlu1 %v1621_v47, %s2565_s29  ;;  %v2316_v48 = vpop.f32.mrb[33].mxu0 }
 0xc07   : > { %v1624_v49 = vpop.f32.mrb[34].mxu0 }
 0xc08   : > { %v2317_v50 = vpop.f32.mrb[35].mxu0 }
 0xc74   : > { %v1630_v51 = vpop.permute.xlu0 %1629 }
 0xc75   : > { %1636 = vst.msk [vmem:[#allocation2] sm:$0xff] %vm1635_vm7, %v1630_v51 }
 0xc78   : > { %v1632_v52 = vpop.permute.xlu1 %1631 }
 0xc79   : > { %1637 = vst.msk [vmem:[#allocation2 + $0x8] sm:$0xff] %vm1635_vm7, %v1632_v52 }
 0xc7c   : > { %v1638_v53 = vld [vmem:[#allocation2] sm:$0xff] }
 0xc80   : > { %v1639_v54 = vld [vmem:[#allocation2 + $0x8] sm:$0xff] }
 0xc81   : > { %v1640_v55 = vpack.c.bf16 %v1639_v54, %v1638_v53 }
 0xc83   : > { %2323 = vmatmul.mubr.msk.bf16.vlgmr.msra.gmra.mrb[32].mxu1 %vm614_vm1, %v1640_v55 }
 0xc84   : > { %2342 = vmatprep.mubr.msk.bf16.mxu1 %vm2551_vm2, %v2550_v17  ;;  %2335 = vmatpush3.bf16.msra.mxu1 %v2413_v32 }
 0xc85   : > { %2336 = vmatprep.subr.bf16.mxu1 %v2550_v17 }
 0xc88   : > { %2337 = vmatpush3.bf16.msra.mxu1 %v2414_v33 }
 0xc89   : > { %2338 = vmatprep.subr.bf16.mxu1 %v2550_v17 }
 0xc8c   : > { %2339 = vmatpush3.bf16.msra.mxu1 %v2415_v34 }
 0xc8d   : > { %2340 = vmatprep.subr.bf16.mxu1 %v2550_v17 }
 0xc90   : > { %2341 = vmatpush3.bf16.msra.mxu1 %v2416_v35 }
 0xd56   : > { %v1701_v57 = vpop.f32.mrb[32].mxu1 }
 0xd57   : > { %v1702_v58 = vadd.f32 %v2142_v56, %v1701_v57  ;;  %v2324_v59 = vpop.f32.mrb[33].mxu1 }
 0xd58   : > { %v1704_v60 = vpop.f32.mrb[34].mxu1 }
 0xd59   : > { %v2935_v61 = vadd.f32 %v1702_v58, %v2749_v2  ;;  %v1705_v62 = vadd.f32 %v2142_v56, %v1704_v60  ;;  %v2325_v63 = vpop.f32.mrb[35].mxu1 }
 0xd5a   : > { %v2152_v63 = vld [vmem:[%s598_s12] ss:$0 sm:$0xff]  ;;  %s2489_s12 = scalar_lea.vmem %s1939_s4, 256 }
 0xd5b   : > { %v2938_v0 = vadd.f32 %v1705_v62, %v2751_v3  ;;  %v1712_v1 = vsel %vm614_vm1, %v2935_v61, 0.0  ;;  %p2490_p8 = scmp.ne.s32.totalorder %s1939_s4, %s2489_s12  ;;  %p2497_p13 = scmp.lt.s32.totalorder %s2489_s12, %s2489_s12 }
 0xd5c   : > { %1713 = vadd.xlane.f32.xlu0 %v1712_v1 }
 0xd5d   : > { %v1715_v4 = vsel %vm614_vm1, %v2938_v0, 0.0  ;;  %p2491_p10 = pnand %p2490_p8, %p2982_p6  ;;  %p2498_p0 = por %p2497_p13, %p2496_p12 }
 0xd5e   : > { %1716 = vadd.xlane.f32.xlu1 %v1715_v4 }
 0xd5f   : > { %p2492_p11 = pneg %p2491_p10 }
 0xd61   : > { %p2499_p1 = pnand %p2498_p0, %p2492_p11 }
 0xde9   : > { %v1714_v5 = vpop.xlane.xlu0 %1713 }
 0xdea   : > { %v1718_v6 = vmul.f32 0.03125, %v1714_v5 }
 0xdeb   : > { %v1717_v7 = vpop.xlane.xlu1 %1716 }
 0xdec   : > { %v1720_v2 = vsub.f32 %v2935_v61, %v1718_v6  ;;  %v1719_v8 = vmul.f32 0.03125, %v1717_v7 }
 0xdee   : > { %v1721_v10 = vsub.f32 %v2938_v0, %v1719_v8  ;;  %v1722_v3 = vmul.f32 %v1720_v2, %v1720_v2 }
 0xdf0   : > { %v1724_v11 = vsel %vm614_vm1, %v1722_v3, 0.0  ;;  %v1723_v12 = vmul.f32 %v1721_v10, %v1721_v10 }
 0xdf1   : > { %1725 = vadd.xlane.f32.xlu0 %v1724_v11 }
 0xdf2   : > { %v1727_v14 = vsel %vm614_vm1, %v1723_v12, 0.0 }
 0xdf5   : > { %1728 = vadd.xlane.f32.xlu0 %v1727_v14 }
 0xe7e   : > { %v1726_v18 = vpop.xlane.xlu0 %1725 }
 0xe7f   : > { %v1730_v19 = vmul.f32 0.03125, %v1726_v18 }
 0xe81   : > { %v1732_v20 = vadd.f32 1e-05, %v1730_v19 }
 0xe82   : > { %v1729_v21 = vpop.xlane.xlu0 %1728 }
 0xe83   : > { %2453 = vrsqrt.f32 %v1732_v20  ;;  %v1731_v22 = vmul.f32 0.03125, %v1729_v21 }
 0xe85   : > { %v1733_v23 = vadd.f32 1e-05, %v1731_v22 }
 0xe87   : > { %2455 = vrsqrt.f32 %v1733_v23 }
 0xe8d   : > { %v2454_v40 = vpop.eup %2453 }
 0xe8e   : > { %v1736_v9 = vmul.f32 %v2454_v40, %v1720_v2 }
 0xe90   : > { %v1744_v25 = vmul.f32 %v2146_v13, %v1736_v9 }
 0xe91   : > { %v2456_v24 = vpop.eup %2455 }
 0xe92   : > { %v1737_v26 = vmul.f32 %v2456_v24, %v1721_v10  ;;  %v1752_v29 = vadd.f32 %v2147_v27, %v1744_v25 }
 0xe94   : > { %v1745_v28 = vmul.f32 %v2146_v13, %v1737_v26 }
 0xe96   : > { %v1753_v30 = vadd.f32 %v2147_v27, %v1745_v28 }
 0xe98   : > { %v1754_v31 = vpack.c.bf16 %v1753_v30, %v1752_v29 }
 0xe9a   : > { %2331 = vmatmul.mubr.msk.bf16.vlgmr.msra.gmra.mrb[36].mxu0 %vm614_vm1, %v1754_v31 }
 0xf6d   : > { %v1815_v37 = vpop.f32.mrb[36].mxu0 }
 0xf6e   : > { %v1816_v38 = vadd.f32 %v2148_v36, %v1815_v37  ;;  %v2332_v39 = vpop.f32.mrb[37].mxu0 }
 0xf6f   : > { %v1818_v41 = vpop.f32.mrb[38].mxu0 }
 0xf70   : > { %v1824_v42 = vmul.f32 0.044715, %v1816_v38  ;;  %v1819_v43 = vadd.f32 %v2148_v36, %v1818_v41  ;;  %v2333_v44 = vpop.f32.mrb[39].mxu0  ;;  %v1822_v56 = vmul.f32 0.5, %v1816_v38 }
 0xf72   : > { %v1826_v45 = vmul.f32 %v1824_v42, %v1816_v38  ;;  %v1825_v46 = vmul.f32 0.044715, %v1819_v43  ;;  %v1823_v57 = vmul.f32 0.5, %v1819_v43 }
 0xf74   : > { %v1828_v47 = vmul.f32 %v1826_v45, %v1816_v38  ;;  %v1827_v48 = vmul.f32 %v1825_v46, %v1819_v43 }
 0xf76   : > { %v1830_v49 = vadd.f32 %v1828_v47, %v1816_v38  ;;  %v1829_v50 = vmul.f32 %v1827_v48, %v1819_v43 }
 0xf78   : > { %v1832_v17 = vmul.f32 0.7978846, %v1830_v49  ;;  %v1831_v51 = vadd.f32 %v1829_v50, %v1819_v43 }
 0xf7a   : > { %2457 = vtanh.f32 %v1832_v17  ;;  %v1833_v52 = vmul.f32 0.7978846, %v1831_v51 }
 0xf7c   : > { %2459 = vtanh.f32 %v1833_v52 }
 0xf84   : > { %v2458_v53 = vpop.eup %2457 }
 0xf85   : > { %v1836_v54 = vadd.f32 1.0, %v2458_v53 }
 0xf86   : > { %v2460_v55 = vpop.eup %2459 }
 0xf87   : > { %v1837_v58 = vadd.f32 1.0, %v2460_v55  ;;  %v1838_v59 = vmul.f32 %v1836_v54, %v1822_v56 }
 0xf89   : > { %v1839_v60 = vmul.f32 %v1837_v58, %v1823_v57 }
 0xf8b   : > { %v1840_v62 = vpack.c.bf16 %v1839_v60, %v1838_v59 }
 0xf8d   : > { %2343 = vmatmul.mubr.msk.bf16.vlgmr.msra.gmra.mrb[36].mxu1 %vm1880_vm8, %v1840_v62 }
0x1060   : > { %v1918_v1 = vpop.f32.mrb[36].mxu1 }
0x1061   : > { %v1919_v4 = vadd.f32 %v2152_v63, %v1918_v1  ;;  %v2344_v5 = vpop.f32.mrb[37].mxu1 }
0x1062   : > { %v1921_v6 = vpop.f32.mrb[38].mxu1 }
0x1063   : > { %v1925_v7 = vadd.f32 %v1919_v4, %v2935_v61  ;;  %v1922_v2 = vadd.f32 %v2152_v63, %v1921_v6  ;;  %v2345_v8 = vpop.f32.mrb[39].mxu1 }
0x1065   : > { %1927 = vst.msk [vmem:[#allocation6] sm:$0xff] %vm614_vm1, %v1925_v7  ;;  %v1926_v10 = vadd.f32 %v1922_v2, %v2938_v0 }
0x1067   : > { %1928 = vst.msk [vmem:[#allocation6 + $0x8] sm:$0xff] %vm614_vm1, %v1926_v10 }
0x1068   : > { %2502 = shalt.err (!%p2499_p1)
}
0x1069   : > { %s3060_s29 = sld [smem:[#allocation14_spill]] }
0x106f   : > { %s2503_s0 = scalar_lea.hbm %s3060_s29, 256 }
0x1070   : > { %p2504_p2 = scmp.ne.s32.totalorder %s3060_s29, %s2503_s0  ;;  %p2509_p9 = scmp.lt.u32.totalorder %s2503_s0, %s3060_s29 }
0x1072   : > { %p2505_p5 = pnand %p2504_p2, %p2982_p6 }
0x1074   : > { %p2506_p7 = pneg %p2505_p5 }
0x1076   : > { %p2511_p3 = pnand %p2509_p9, %p2506_p7 }
0x1078   : > { %2514 = shalt.err (!%p2511_p3)
}
0x1079   : > { %s2567_s13 = smov 128  }
0x107a   : > { %2351 = dma.vmem_to_hbm [thread:$0]  (%p2982_p6), %s1939_s4, 256, %s3060_s29, [#allocation5], %s2567_s13, %s2567_s13, %s2563_s19  }
0x107b   : > { %2532 = dma.done.wait (%p2982_p6), [#allocation5], 256  }
0x107c   : > { %2534 = vsyncadd (%p2982_p6), [#allocation5], 4294967040 }
0x107d PF: > { %s24_s23 = sadd.s32 1, %s2545_s23   ;;  %s3061_s21 = sld [smem:[#allocation9_spill]] }
0x107e   : > { %p21_p4 = scmp.ge.s32.totalorder %s24_s23, 4   ;;  %s3062_s22 = sld [smem:[#allocation10_spill]] }
0x1080   :  { %23 = sbr.rel (!%p21_p4) target bundleno = 8 (0x8), region = 136 }
0x1087   :  { %1954 = vsyncpa [#allocation4], 1 }
0x1088   :  { %1956 = vsyncpa [#allocation4 + $0x1], 1 }
0x1089   :  { %1957 = vsyncpa [#allocation5], 1 }
0x108a   :  { %1959 = vsyncpa [#allocation5 + $0x1], 1 }

</bundles_post_ra>
